<compile_context>
chip_gen: v5e
topology: v5e:2x2
jax: 0.10.0
libtpu: 0.0.40
codegen_flags: <defaults>
</compile_context>

<pallas_src>
import math
from functools import partial

import jax
import jax.numpy as jnp
from jax.experimental import pallas as pl
from jax.experimental.pallas import tpu as pltpu


def _layer_norm(x, gamma, beta, eps=1e-5):
    # torch nn.LayerNorm([D]): biased variance over the last dim, affine.
    mu = jnp.mean(x, axis=-1, keepdims=True)
    var = jnp.mean((x - mu) ** 2, axis=-1, keepdims=True)
    return (x - mu) * jax.lax.rsqrt(var + eps) * gamma + beta


def encoder_block_kernel(x_ref, wqkv_ref, wo_ref,
                         g1_ref, be1_ref,
                         w1_ref, b1_ref, w2_ref, b2_ref,
                         g2_ref, be2_ref,
                         o_ref,
                         scores_ref, ctx_ref, *, head_num):
    f32 = jnp.float32
    bt, n, d = x_ref.shape
    dh = d // head_num
    rows = bt * n
    scale = 1.0 / math.sqrt(dh)          # torch: QK / (dim // head_num) ** 0.5
    cdt = wqkv_ref.dtype                 # matmul-input dtype (bf16 default, or f32)

    # ---- fused QKV projection: one (rows, d) @ (d, 3d) full-width MXU matmul ----
    xa = x_ref[...].reshape(rows, d)     # residual path stays f32
    xc = xa.astype(cdt)
    qkv = jnp.dot(xc, wqkv_ref[...], preferred_element_type=f32)
    q3 = (qkv[:, :d] * scale).astype(cdt).reshape(bt, n, d)
    k3 = qkv[:, d:2 * d].astype(cdt).reshape(bt, n, d)
    v3 = qkv[:, 2 * d:].astype(cdt).reshape(bt, n, d)

    # ---- per-(batch, head) scores written into the (head, bt, n, n) scratch ----
    for h in range(head_num):
        scores_ref[h] = jnp.einsum(
            "bqd,bkd->bqk",
            q3[..., h * dh:(h + 1) * dh],
            k3[..., h * dh:(h + 1) * dh],
            preferred_element_type=f32)

    # Softmax over the HEAD axis (faithful to the reference nn.Softmax(dim=1) quirk).
    mx = scores_ref[0]
    for h in range(1, head_num):
        mx = jnp.maximum(mx, scores_ref[h])
    den = jnp.zeros_like(mx)
    for h in range(head_num):
        e = jnp.exp(scores_ref[h] - mx)
        scores_ref[h] = e                # in-place: no second (H, bt, n, n) copy
        den = den + e
    inv = pl.reciprocal(den, approx=True)        # EUP reciprocal (~2^-12 error)
    # TODO(synk): attention-prob dropout omitted (identity at inference).

    # ---- per-head context into lane band h*dh of ctx scratch, then ONE full-width
    #      D-contraction matmul against Wo (full MXU depth, no K=dh matmuls) ----
    for h in range(head_num):
        attn_h = (scores_ref[h] * inv).astype(cdt)               # (bt, n, n)
        ctx_h = jnp.einsum("bqk,bkd->bqd", attn_h,
                           v3[..., h * dh:(h + 1) * dh],
                           preferred_element_type=f32)           # (bt, n, dh)
        ctx_ref[:, h * dh:(h + 1) * dh] = ctx_h.reshape(rows, dh).astype(cdt)
    attn_out = jnp.dot(ctx_ref[...], wo_ref[...], preferred_element_type=f32)

    # ---- residual + LayerNorm 1 ----
    x1 = _layer_norm(attn_out + xa, g1_ref[...], be1_ref[...])

    # ---- feed-forward: Linear -> GELU(tanh approx, EUP) -> Linear (dropouts identity) ----
    # TODO(synk): for ViT-L-class weights (>> VMEM) tile the FFN over mlp_dim chunks.
    h1 = jnp.dot(x1.astype(cdt), w1_ref[...], preferred_element_type=f32) + b1_ref[...]
    c = math.sqrt(2.0 / math.pi)
    g = 0.5 * h1 * (1.0 + jnp.tanh(c * (h1 + 0.044715 * (h1 * h1 * h1))))
    ff = jnp.dot(g.astype(cdt), w2_ref[...], preferred_element_type=f32) + b2_ref[...]

    # ---- residual + LayerNorm 2 ----
    o_ref[...] = _layer_norm(ff + x1, g2_ref[...], be2_ref[...]).reshape(bt, n, d)


def _vmem_cap_bytes():
    try:
        return int(pltpu.get_tpu_info().vmem_capacity_bytes)   # 128 MiB v5e/v6e, 64 MiB v7x
    except Exception:
        return 64 * 1024 * 1024                                # conservative fallback


def _live_bytes_estimate(block_b, N, D, H, mlp_dim, weight_bytes, cdt_size, weight_buffers):
    """Honest VMEM live-set estimate for one grid step."""
    rows = block_b * N
    act_io = 2 * 2 * block_b * N * D * 4                    # in/out blocks, double-buffered
    qkv = rows * 3 * D * 4 + 3 * rows * D * cdt_size        # f32 matmul out + q/k/v copies
    scores = (H + 2) * block_b * N * N * 4                  # scratch + mx/den temporaries
    ctx = rows * D * cdt_size
    ffn = 2 * rows * mlp_dim * 4 + rows * mlp_dim * cdt_size
    misc = 4 * rows * D * 4                                  # attn_out, x1, ff, LN temps
    slack = 4 * 1024 * 1024
    return weight_buffers * weight_bytes + act_io + qkv + scores + ctx + ffn + misc + slack


def _pick_block_b(B, N, D, H, mlp_dim, weight_bytes, cdt_size, weight_buffers, budget,
                  target_rows=256):
    """Batch tile from the live-set estimate; always >= 2 grid steps when B >= 2 so
    both v7x TensorCores get work; grow past the 256-row MXU target when VMEM allows."""
    est = lambda t: _live_bytes_estimate(t, N, D, H, mlp_dim, weight_bytes,
                                         cdt_size, weight_buffers)
    divisors = [t for t in range(1, B + 1) if B % t == 0]
    cands = [t for t in divisors if B // t >= 2] or [min(divisors)]
    fit = [t for t in cands if est(t) <= budget]
    if not fit:
        return cands[0]                 # smallest tile; compiler fights for the rest
    reach = [t for t in fit if t * N >= target_rows]
    if reach:
        grown = [t for t in reach if est(t) <= budget // 2]
        return grown[-1] if grown else reach[0]
    return fit[-1]


def encoder_block(x, params, head_num, *, matmul_dtype=jnp.bfloat16, block_b=None,
                  single_buffer_weights=True):
    """EncoderBlock forward. bf16 MXU inputs + f32 accumulation by default; pass
    matmul_dtype=jnp.float32 for near-exact parity with the f32 torch reference."""
    B, N, D = x.shape
    assert D % head_num == 0, "dim must be divisible by head_num"
    mlp_dim = params["w1"].shape[1]
    cdt = jnp.dtype(matmul_dtype)

    # Fused QKV weight (D, 3D) and matmul weights in the compute dtype; LN / bias f32.
    wqkv = jnp.concatenate([params["wq"], params["wk"], params["wv"]], axis=1).astype(cdt)
    wo = params["wo"].astype(cdt)
    w1 = params["w1"].astype(cdt)
    w2 = params["w2"].astype(cdt)
    g1 = params["g1"].astype(jnp.float32)
    be1 = params["be1"].astype(jnp.float32)
    g2 = params["g2"].astype(jnp.float32)
    be2 = params["be2"].astype(jnp.float32)
    b1 = params["b1"].astype(jnp.float32)
    b2 = params["b2"].astype(jnp.float32)
    weights = [wqkv, wo, g1, be1, w1, b1, w2, b2, g2, be2]

    nbytes = lambda a: a.size * a.dtype.itemsize
    weight_bytes = sum(nbytes(w) for w in weights)
    cdt_size = cdt.itemsize
    cap = _vmem_cap_bytes()
    budget = int(0.9 * cap)
    wbuf = 1 if single_buffer_weights else 2

    if block_b is None:
        block_b = _pick_block_b(B, N, D, head_num, mlp_dim, weight_bytes,
                                cdt_size, wbuf, budget)
    assert B % block_b == 0

    required = _live_bytes_estimate(block_b, N, D, head_num, mlp_dim,
                                    weight_bytes, cdt_size, wbuf)
    vmem_limit = int(min(budget, max(required, 64 * 1024 * 1024)))

    cost = pl.CostEstimate(
        flops=2 * B * N * D * (4 * D + 2 * mlp_dim) + 4 * B * N * N * D,
        transcendentals=B * head_num * N * N + B * N * mlp_dim,
        bytes_accessed=nbytes(x) + B * N * D * 4 + weight_bytes,
    )

    kernel = partial(encoder_block_kernel, head_num=head_num)
    out_shape = jax.ShapeDtypeStruct((B, N, D), jnp.float32)
    scratch = [pltpu.VMEM((head_num, block_b, N, N), jnp.float32),   # scores / probs
               pltpu.VMEM((block_b * N, D), cdt)]                    # assembled context

    def resident(arr, single):
        # Full-array block, constant index map: resident across the batch grid.
        r = len(arr.shape)
        kwargs = {"pipeline_mode": pl.Buffered(1)} if single else {}
        return pl.BlockSpec(arr.shape, lambda i, _r=r: (0,) * _r, **kwargs)

    def build_and_call(single):
        return pl.pallas_call(
            kernel,
            out_shape=out_shape,
            grid=(B // block_b,),
            in_specs=[pl.BlockSpec((block_b, N, D), lambda i: (i, 0, 0))]
                     + [resident(w, single) for w in weights],
            out_specs=pl.BlockSpec((block_b, N, D), lambda i: (i, 0, 0)),
            scratch_shapes=scratch,
            compiler_params=pltpu.CompilerParams(
                dimension_semantics=("parallel",),
                vmem_limit_bytes=vmem_limit),
            cost_estimate=cost,
        )(x, *weights)

    if single_buffer_weights:
        try:
            return build_and_call(True)
        except Exception:
            # pipeline_mode / Buffered(1) unsupported on this JAX: default buffering.
            return build_and_call(False)
    return build_and_call(False)


def encoder_block_ref(x, params, head_num):
    # Pure-JAX reference mirroring the torch module op-for-op (eval mode, exact GELU).
    B, N, D = x.shape
    dh = D // head_num
    q = x @ params["wq"]
    k = x @ params["wk"]
    v = x @ params["wv"]
    split = lambda t: t.reshape(B, N, head_num, dh).transpose(0, 2, 1, 3)
    Q, K, V = split(q), split(k), split(v)
    QK = jnp.einsum("bhnd,bhmd->bhnm", Q, K) / math.sqrt(dh)
    A = jax.nn.softmax(QK, axis=1)                       # nn.Softmax(dim=1): over heads
    ctx = jnp.einsum("bhnm,bhmd->bhnd", A, V)
    ctx = ctx.transpose(0, 2, 1, 3).reshape(B, N, D)
    attn_out = ctx @ params["wo"]
    x1 = _layer_norm(attn_out + x, params["g1"], params["be1"])
    h1 = x1 @ params["w1"] + params["b1"]
    g = 0.5 * h1 * (1.0 + jax.scipy.special.erf(h1 / math.sqrt(2.0)))
    ff = g @ params["w2"] + params["b2"]
    return _layer_norm(ff + x1, params["g2"], params["be2"])


if __name__ == "__main__":
    B, N, D, HEADS, MLP = 4, 8, 32, 2, 64

    key = jax.random.PRNGKey(0)
    ks = jax.random.split(key, 9)
    x = jax.random.normal(ks[0], (B, N, D), jnp.float32)

    params = {
        # attention projections (no bias), stored as (in, out)
        "wq": 0.05 * jax.random.normal(ks[1], (D, D), jnp.float32),
        "wk": 0.05 * jax.random.normal(ks[2], (D, D), jnp.float32),
        "wv": 0.05 * jax.random.normal(ks[3], (D, D), jnp.float32),
        "wo": 0.05 * jax.random.normal(ks[4], (D, D), jnp.float32),
        # LayerNorm 1 / 2 affine params (torch default init: ones / zeros)
        "g1": jnp.ones((1, D), jnp.float32),
        "be1": jnp.zeros((1, D), jnp.float32),
        "g2": jnp.ones((1, D), jnp.float32),
        "be2": jnp.zeros((1, D), jnp.float32),
        # feed-forward: Linear(D->MLP) + bias, Linear(MLP->D) + bias
        "w1": 0.05 * jax.random.normal(ks[5], (D, MLP), jnp.float32),
        "b1": 0.01 * jax.random.normal(ks[6], (1, MLP), jnp.float32),
        "w2": 0.05 * jax.random.normal(ks[7], (MLP, D), jnp.float32),
        "b2": 0.01 * jax.random.normal(ks[8], (1, D), jnp.float32),
    }

    with jax.default_matmul_precision("highest"):
        ref = encoder_block_ref(x, params, HEADS)

    # Default fast path: bf16 MXU inputs, f32 accumulation.
    out = encoder_block(x, params, HEADS)
    jax.block_until_ready(out)
    assert out.shape == (B, N, D) and out.dtype == jnp.float32
    assert bool(jnp.all(jnp.isfinite(out)))
    err_bf16 = float(jnp.max(jnp.abs(out - ref)))
    assert err_bf16 < 5e-2, f"bf16 kernel/reference mismatch: max abs err = {err_bf16}"

    # f32 matmul path: near-exact parity with the torch reference.
    out_f32 = encoder_block(x, params, HEADS, matmul_dtype=jnp.float32)
    jax.block_until_ready(out_f32)
    err_f32 = float(jnp.max(jnp.abs(out_f32 - ref)))
    assert err_f32 < 5e-3, f"f32 kernel/reference mismatch: max abs err = {err_f32}"

    print("KERNEL_OK")
</pallas_src>

<mosaic_0001>
module attributes {stable_mosaic.version = 11 : i64} {
  func.func @encoder_block_kernel(%arg0: i32, %arg1: memref<2x8x32xf32, #tpu.memory_space<vmem>>, %arg2: memref<32x96xbf16, #tpu.memory_space<vmem>>, %arg3: memref<32x32xbf16, #tpu.memory_space<vmem>>, %arg4: memref<1x32xf32, #tpu.memory_space<vmem>>, %arg5: memref<1x32xf32, #tpu.memory_space<vmem>>, %arg6: memref<32x64xbf16, #tpu.memory_space<vmem>>, %arg7: memref<1x64xf32, #tpu.memory_space<vmem>>, %arg8: memref<64x32xbf16, #tpu.memory_space<vmem>>, %arg9: memref<1x32xf32, #tpu.memory_space<vmem>>, %arg10: memref<1x32xf32, #tpu.memory_space<vmem>>, %arg11: memref<1x32xf32, #tpu.memory_space<vmem>>, %arg12: memref<2x8x32xf32, #tpu.memory_space<vmem>>, %arg13: memref<2x2x8x8xf32, #tpu.memory_space<vmem>>, %arg14: memref<16x32xbf16, #tpu.memory_space<vmem>>) attributes {dimension_semantics = [#tpu.dimension_semantics<parallel>], iteration_bounds = array<i64: 2>, scalar_prefetch = 0 : i64, scratch_operands = 2 : i64, tpu.core_type = #tpu.core_type<tc>, window_params = [{transform_indices = @transform_0, window_bounds = array<i64: 2, 8, 32>}, {pipeline_mode = #tpu.pipeline_mode<synchronous>, transform_indices = @transform_1, window_bounds = array<i64: 32, 96>}, {pipeline_mode = #tpu.pipeline_mode<synchronous>, transform_indices = @transform_2, window_bounds = array<i64: 32, 32>}, {pipeline_mode = #tpu.pipeline_mode<synchronous>, transform_indices = @transform_3, window_bounds = array<i64: 1, 32>}, {pipeline_mode = #tpu.pipeline_mode<synchronous>, transform_indices = @transform_4, window_bounds = array<i64: 1, 32>}, {pipeline_mode = #tpu.pipeline_mode<synchronous>, transform_indices = @transform_5, window_bounds = array<i64: 32, 64>}, {pipeline_mode = #tpu.pipeline_mode<synchronous>, transform_indices = @transform_6, window_bounds = array<i64: 1, 64>}, {pipeline_mode = #tpu.pipeline_mode<synchronous>, transform_indices = @transform_7, window_bounds = array<i64: 64, 32>}, {pipeline_mode = #tpu.pipeline_mode<synchronous>, transform_indices = @transform_8, window_bounds = array<i64: 1, 32>}, {pipeline_mode = #tpu.pipeline_mode<synchronous>, transform_indices = @transform_9, window_bounds = array<i64: 1, 32>}, {pipeline_mode = #tpu.pipeline_mode<synchronous>, transform_indices = @transform_10, window_bounds = array<i64: 1, 32>}, {transform_indices = @transform_11, window_bounds = array<i64: 2, 8, 32>}]} {
    %c0 = arith.constant 0 : index
    %c0_0 = arith.constant 0 : index
    %c0_1 = arith.constant 0 : index
    %0 = vector.load %arg1[%c0, %c0_0, %c0_1] : memref<2x8x32xf32, #tpu.memory_space<vmem>>, vector<2x8x32xf32>
    %1 = vector.shape_cast %0 : vector<2x8x32xf32> to vector<16x32xf32>
    %2 = arith.truncf %1 : vector<16x32xf32> to vector<16x32xbf16>
    %c0_2 = arith.constant 0 : index
    %c0_3 = arith.constant 0 : index
    %3 = vector.load %arg2[%c0_2, %c0_3] : memref<32x96xbf16, #tpu.memory_space<vmem>>, vector<32x96xbf16>
    %cst = arith.constant dense<0.000000e+00> : vector<16x96xf32>
    %4 = tpu.matmul %2, %3, %cst {dimension_numbers = #tpu.dot_dimension_numbers<[1], [0], [0], [1], [0, 0, 1, 1], [], []>} : vector<16x32xbf16>, vector<32x96xbf16>, vector<16x96xf32> -> vector<16x96xf32>
    %5 = vector.extract_strided_slice %4 {offsets = [0, 0], sizes = [16, 32], strides = [1, 1]} : vector<16x96xf32> to vector<16x32xf32>
    %cst_4 = arith.constant 2.500000e-01 : f32
    %6 = vector.broadcast %cst_4 : f32 to vector<16x32xf32>
    %7 = arith.mulf %5, %6 : vector<16x32xf32>
    %8 = arith.truncf %7 : vector<16x32xf32> to vector<16x32xbf16>
    %9 = vector.shape_cast %8 : vector<16x32xbf16> to vector<2x8x32xbf16>
    %10 = vector.extract_strided_slice %4 {offsets = [0, 32], sizes = [16, 32], strides = [1, 1]} : vector<16x96xf32> to vector<16x32xf32>
    %11 = arith.truncf %10 : vector<16x32xf32> to vector<16x32xbf16>
    %12 = vector.shape_cast %11 : vector<16x32xbf16> to vector<2x8x32xbf16>
    %13 = vector.extract_strided_slice %4 {offsets = [0, 64], sizes = [16, 32], strides = [1, 1]} : vector<16x96xf32> to vector<16x32xf32>
    %14 = arith.truncf %13 : vector<16x32xf32> to vector<16x32xbf16>
    %15 = vector.shape_cast %14 : vector<16x32xbf16> to vector<2x8x32xbf16>
    %16 = vector.extract_strided_slice %9 {offsets = [0, 0, 0], sizes = [2, 8, 16], strides = [1, 1, 1]} : vector<2x8x32xbf16> to vector<2x8x16xbf16>
    %17 = vector.extract_strided_slice %12 {offsets = [0, 0, 0], sizes = [2, 8, 16], strides = [1, 1, 1]} : vector<2x8x32xbf16> to vector<2x8x16xbf16>
    "tpu.trace_start"() <{level = 10 : i32, message = "bqd,bkd->bqk"}> : () -> ()
    %cst_5 = arith.constant dense<0.000000e+00> : vector<2x8x8xf32>
    %18 = tpu.matmul %16, %17, %cst_5 {dimension_numbers = #tpu.dot_dimension_numbers<[2], [2], [1], [1], [0, 0, 0, 1, 1, 1], [0], [0]>} : vector<2x8x16xbf16>, vector<2x8x16xbf16>, vector<2x8x8xf32> -> vector<2x8x8xf32>
    "tpu.trace_stop"() : () -> ()
    %c0_6 = arith.constant 0 : index
    %c0_7 = arith.constant 0 : index
    %c0_8 = arith.constant 0 : index
    %c0_9 = arith.constant 0 : index
    %19 = vector.load %arg13[%c0_6, %c0_7, %c0_8, %c0_9] : memref<2x2x8x8xf32, #tpu.memory_space<vmem>>, vector<1x2x8x8xf32>
    %20 = vector.shape_cast %19 : vector<1x2x8x8xf32> to vector<2x8x8xf32>
    %21 = vector.shape_cast %18 : vector<2x8x8xf32> to vector<1x2x8x8xf32>
    tpu.vector_store %arg13[%c0_6, %c0_7, %c0_8, %c0_9], %21 {strides = array<i32>} : memref<2x2x8x8xf32, #tpu.memory_space<vmem>>, vector<1x2x8x8xf32>,
    %22 = vector.extract_strided_slice %9 {offsets = [0, 0, 16], sizes = [2, 8, 16], strides = [1, 1, 1]} : vector<2x8x32xbf16> to vector<2x8x16xbf16>
    %23 = vector.extract_strided_slice %12 {offsets = [0, 0, 16], sizes = [2, 8, 16], strides = [1, 1, 1]} : vector<2x8x32xbf16> to vector<2x8x16xbf16>
    "tpu.trace_start"() <{level = 10 : i32, message = "bqd,bkd->bqk"}> : () -> ()
    %cst_10 = arith.constant dense<0.000000e+00> : vector<2x8x8xf32>
    %24 = tpu.matmul %22, %23, %cst_10 {dimension_numbers = #tpu.dot_dimension_numbers<[2], [2], [1], [1], [0, 0, 0, 1, 1, 1], [0], [0]>} : vector<2x8x16xbf16>, vector<2x8x16xbf16>, vector<2x8x8xf32> -> vector<2x8x8xf32>
    "tpu.trace_stop"() : () -> ()
    %c1 = arith.constant 1 : index
    %c0_11 = arith.constant 0 : index
    %c0_12 = arith.constant 0 : index
    %c0_13 = arith.constant 0 : index
    %25 = vector.load %arg13[%c1, %c0_11, %c0_12, %c0_13] : memref<2x2x8x8xf32, #tpu.memory_space<vmem>>, vector<1x2x8x8xf32>
    %26 = vector.shape_cast %25 : vector<1x2x8x8xf32> to vector<2x8x8xf32>
    %27 = vector.shape_cast %24 : vector<2x8x8xf32> to vector<1x2x8x8xf32>
    tpu.vector_store %arg13[%c1, %c0_11, %c0_12, %c0_13], %27 {strides = array<i32>} : memref<2x2x8x8xf32, #tpu.memory_space<vmem>>, vector<1x2x8x8xf32>,
    %c0_14 = arith.constant 0 : index
    %c0_15 = arith.constant 0 : index
    %c0_16 = arith.constant 0 : index
    %c0_17 = arith.constant 0 : index
    %28 = vector.load %arg13[%c0_14, %c0_15, %c0_16, %c0_17] : memref<2x2x8x8xf32, #tpu.memory_space<vmem>>, vector<1x2x8x8xf32>
    %29 = vector.shape_cast %28 : vector<1x2x8x8xf32> to vector<2x8x8xf32>
    %c1_18 = arith.constant 1 : index
    %c0_19 = arith.constant 0 : index
    %c0_20 = arith.constant 0 : index
    %c0_21 = arith.constant 0 : index
    %30 = vector.load %arg13[%c1_18, %c0_19, %c0_20, %c0_21] : memref<2x2x8x8xf32, #tpu.memory_space<vmem>>, vector<1x2x8x8xf32>
    %31 = vector.shape_cast %30 : vector<1x2x8x8xf32> to vector<2x8x8xf32>
    %32 = arith.maximumf %29, %31 : vector<2x8x8xf32>
    %cst_22 = arith.constant 0.000000e+00 : f32
    %33 = vector.broadcast %cst_22 : f32 to vector<2x8x8xf32>
    %c0_23 = arith.constant 0 : index
    %c0_24 = arith.constant 0 : index
    %c0_25 = arith.constant 0 : index
    %c0_26 = arith.constant 0 : index
    %34 = vector.load %arg13[%c0_23, %c0_24, %c0_25, %c0_26] : memref<2x2x8x8xf32, #tpu.memory_space<vmem>>, vector<1x2x8x8xf32>
    %35 = vector.shape_cast %34 : vector<1x2x8x8xf32> to vector<2x8x8xf32>
    %36 = arith.subf %35, %32 : vector<2x8x8xf32>
    %37 = math.exp %36 : vector<2x8x8xf32>
    %c0_27 = arith.constant 0 : index
    %c0_28 = arith.constant 0 : index
    %c0_29 = arith.constant 0 : index
    %c0_30 = arith.constant 0 : index
    %38 = vector.load %arg13[%c0_27, %c0_28, %c0_29, %c0_30] : memref<2x2x8x8xf32, #tpu.memory_space<vmem>>, vector<1x2x8x8xf32>
    %39 = vector.shape_cast %38 : vector<1x2x8x8xf32> to vector<2x8x8xf32>
    %40 = vector.shape_cast %37 : vector<2x8x8xf32> to vector<1x2x8x8xf32>
    tpu.vector_store %arg13[%c0_27, %c0_28, %c0_29, %c0_30], %40 {strides = array<i32>} : memref<2x2x8x8xf32, #tpu.memory_space<vmem>>, vector<1x2x8x8xf32>,
    %41 = arith.addf %33, %37 : vector<2x8x8xf32>
    %c1_31 = arith.constant 1 : index
    %c0_32 = arith.constant 0 : index
    %c0_33 = arith.constant 0 : index
    %c0_34 = arith.constant 0 : index
    %42 = vector.load %arg13[%c1_31, %c0_32, %c0_33, %c0_34] : memref<2x2x8x8xf32, #tpu.memory_space<vmem>>, vector<1x2x8x8xf32>
    %43 = vector.shape_cast %42 : vector<1x2x8x8xf32> to vector<2x8x8xf32>
    %44 = arith.subf %43, %32 : vector<2x8x8xf32>
    %45 = math.exp %44 : vector<2x8x8xf32>
    %c1_35 = arith.constant 1 : index
    %c0_36 = arith.constant 0 : index
    %c0_37 = arith.constant 0 : index
    %c0_38 = arith.constant 0 : index
    %46 = vector.load %arg13[%c1_35, %c0_36, %c0_37, %c0_38] : memref<2x2x8x8xf32, #tpu.memory_space<vmem>>, vector<1x2x8x8xf32>
    %47 = vector.shape_cast %46 : vector<1x2x8x8xf32> to vector<2x8x8xf32>
    %48 = vector.shape_cast %45 : vector<2x8x8xf32> to vector<1x2x8x8xf32>
    tpu.vector_store %arg13[%c1_35, %c0_36, %c0_37, %c0_38], %48 {strides = array<i32>} : memref<2x2x8x8xf32, #tpu.memory_space<vmem>>, vector<1x2x8x8xf32>,
    %49 = arith.addf %41, %45 : vector<2x8x8xf32>
    %50 = tpu.reciprocal %49 {approx = true} : vector<2x8x8xf32> -> vector<2x8x8xf32>
    %c0_39 = arith.constant 0 : index
    %c0_40 = arith.constant 0 : index
    %c0_41 = arith.constant 0 : index
    %c0_42 = arith.constant 0 : index
    %51 = vector.load %arg13[%c0_39, %c0_40, %c0_41, %c0_42] : memref<2x2x8x8xf32, #tpu.memory_space<vmem>>, vector<1x2x8x8xf32>
    %52 = vector.shape_cast %51 : vector<1x2x8x8xf32> to vector<2x8x8xf32>
    %53 = arith.mulf %52, %50 : vector<2x8x8xf32>
    %54 = arith.truncf %53 : vector<2x8x8xf32> to vector<2x8x8xbf16>
    %55 = vector.extract_strided_slice %15 {offsets = [0, 0, 0], sizes = [2, 8, 16], strides = [1, 1, 1]} : vector<2x8x32xbf16> to vector<2x8x16xbf16>
    "tpu.trace_start"() <{level = 10 : i32, message = "bqk,bkd->bqd"}> : () -> ()
    %cst_43 = arith.constant dense<0.000000e+00> : vector<2x8x16xf32>
    %56 = tpu.matmul %54, %55, %cst_43 {dimension_numbers = #tpu.dot_dimension_numbers<[2], [1], [1], [2], [0, 0, 0, 1, 1, 2], [0], [0]>} : vector<2x8x8xbf16>, vector<2x8x16xbf16>, vector<2x8x16xf32> -> vector<2x8x16xf32>
    "tpu.trace_stop"() : () -> ()
    %57 = vector.shape_cast %56 : vector<2x8x16xf32> to vector<16x16xf32>
    %58 = arith.truncf %57 : vector<16x16xf32> to vector<16x16xbf16>
    %c0_44 = arith.constant 0 : index
    %c0_45 = arith.constant 0 : index
    %59 = vector.load %arg14[%c0_44, %c0_45] : memref<16x32xbf16, #tpu.memory_space<vmem>>, vector<16x16xbf16>
    tpu.vector_store %arg14[%c0_44, %c0_45], %58 {strides = array<i32>} : memref<16x32xbf16, #tpu.memory_space<vmem>>, vector<16x16xbf16>,
    %c1_46 = arith.constant 1 : index
    %c0_47 = arith.constant 0 : index
    %c0_48 = arith.constant 0 : index
    %c0_49 = arith.constant 0 : index
    %60 = vector.load %arg13[%c1_46, %c0_47, %c0_48, %c0_49] : memref<2x2x8x8xf32, #tpu.memory_space<vmem>>, vector<1x2x8x8xf32>
    %61 = vector.shape_cast %60 : vector<1x2x8x8xf32> to vector<2x8x8xf32>
    %62 = arith.mulf %61, %50 : vector<2x8x8xf32>
    %63 = arith.truncf %62 : vector<2x8x8xf32> to vector<2x8x8xbf16>
    %64 = vector.extract_strided_slice %15 {offsets = [0, 0, 16], sizes = [2, 8, 16], strides = [1, 1, 1]} : vector<2x8x32xbf16> to vector<2x8x16xbf16>
    "tpu.trace_start"() <{level = 10 : i32, message = "bqk,bkd->bqd"}> : () -> ()
    %cst_50 = arith.constant dense<0.000000e+00> : vector<2x8x16xf32>
    %65 = tpu.matmul %63, %64, %cst_50 {dimension_numbers = #tpu.dot_dimension_numbers<[2], [1], [1], [2], [0, 0, 0, 1, 1, 2], [0], [0]>} : vector<2x8x8xbf16>, vector<2x8x16xbf16>, vector<2x8x16xf32> -> vector<2x8x16xf32>
    "tpu.trace_stop"() : () -> ()
    %66 = vector.shape_cast %65 : vector<2x8x16xf32> to vector<16x16xf32>
    %67 = arith.truncf %66 : vector<16x16xf32> to vector<16x16xbf16>
    %c0_51 = arith.constant 0 : index
    %c16 = arith.constant 16 : index
    %68 = vector.load %arg14[%c0_51, %c16] : memref<16x32xbf16, #tpu.memory_space<vmem>>, vector<16x16xbf16>
    tpu.vector_store %arg14[%c0_51, %c16], %67 {strides = array<i32>} : memref<16x32xbf16, #tpu.memory_space<vmem>>, vector<16x16xbf16>,
    %c0_52 = arith.constant 0 : index
    %c0_53 = arith.constant 0 : index
    %69 = vector.load %arg14[%c0_52, %c0_53] : memref<16x32xbf16, #tpu.memory_space<vmem>>, vector<16x32xbf16>
    %c0_54 = arith.constant 0 : index
    %c0_55 = arith.constant 0 : index
    %70 = vector.load %arg3[%c0_54, %c0_55] : memref<32x32xbf16, #tpu.memory_space<vmem>>, vector<32x32xbf16>
    %cst_56 = arith.constant dense<0.000000e+00> : vector<16x32xf32>
    %71 = tpu.matmul %69, %70, %cst_56 {dimension_numbers = #tpu.dot_dimension_numbers<[1], [0], [0], [1], [0, 0, 1, 1], [], []>} : vector<16x32xbf16>, vector<32x32xbf16>, vector<16x32xf32> -> vector<16x32xf32>
    %72 = arith.addf %71, %1 : vector<16x32xf32>
    %c0_57 = arith.constant 0 : index
    %c0_58 = arith.constant 0 : index
    %73 = vector.load %arg4[%c0_57, %c0_58] : memref<1x32xf32, #tpu.memory_space<vmem>>, vector<1x32xf32>
    %c0_59 = arith.constant 0 : index
    %c0_60 = arith.constant 0 : index
    %74 = vector.load %arg5[%c0_59, %c0_60] : memref<1x32xf32, #tpu.memory_space<vmem>>, vector<1x32xf32>
    %cst_61 = arith.constant dense<0.000000e+00> : vector<16xf32>
    %75 = vector.multi_reduction <add>, %72, %cst_61 [1] : vector<16x32xf32> to vector<16xf32>
    %76 = vector.shape_cast %75 : vector<16xf32> to vector<16x1xf32>
    %cst_62 = arith.constant 3.200000e+01 : f32
    %77 = vector.broadcast %cst_62 : f32 to vector<16x1xf32>
    %78 = arith.divf %76, %77 : vector<16x1xf32>
    %79 = vector.broadcast %78 : vector<16x1xf32> to vector<16x32xf32>
    %80 = arith.subf %72, %79 : vector<16x32xf32>
    %81 = arith.mulf %80, %80 : vector<16x32xf32>
    %cst_63 = arith.constant dense<0.000000e+00> : vector<16xf32>
    %82 = vector.multi_reduction <add>, %81, %cst_63 [1] : vector<16x32xf32> to vector<16xf32>
    %83 = vector.shape_cast %82 : vector<16xf32> to vector<16x1xf32>
    %cst_64 = arith.constant 3.200000e+01 : f32
    %84 = vector.broadcast %cst_64 : f32 to vector<16x1xf32>
    %85 = arith.divf %83, %84 : vector<16x1xf32>
    %86 = vector.broadcast %78 : vector<16x1xf32> to vector<16x32xf32>
    %87 = arith.subf %72, %86 : vector<16x32xf32>
    %cst_65 = arith.constant 9.99999974E-6 : f32
    %88 = vector.broadcast %cst_65 : f32 to vector<16x1xf32>
    %89 = arith.addf %85, %88 : vector<16x1xf32>
    %90 = math.rsqrt %89 : vector<16x1xf32>
    %91 = vector.broadcast %90 : vector<16x1xf32> to vector<16x32xf32>
    %92 = arith.mulf %87, %91 : vector<16x32xf32>
    %93 = vector.broadcast %73 : vector<1x32xf32> to vector<16x32xf32>
    %94 = arith.mulf %92, %93 : vector<16x32xf32>
    %95 = vector.broadcast %74 : vector<1x32xf32> to vector<16x32xf32>
    %96 = arith.addf %94, %95 : vector<16x32xf32>
    %97 = arith.truncf %96 : vector<16x32xf32> to vector<16x32xbf16>
    %c0_66 = arith.constant 0 : index
    %c0_67 = arith.constant 0 : index
    %98 = vector.load %arg6[%c0_66, %c0_67] : memref<32x64xbf16, #tpu.memory_space<vmem>>, vector<32x64xbf16>
    %cst_68 = arith.constant dense<0.000000e+00> : vector<16x64xf32>
    %99 = tpu.matmul %97, %98, %cst_68 {dimension_numbers = #tpu.dot_dimension_numbers<[1], [0], [0], [1], [0, 0, 1, 1], [], []>} : vector<16x32xbf16>, vector<32x64xbf16>, vector<16x64xf32> -> vector<16x64xf32>
    %c0_69 = arith.constant 0 : index
    %c0_70 = arith.constant 0 : index
    %100 = vector.load %arg7[%c0_69, %c0_70] : memref<1x64xf32, #tpu.memory_space<vmem>>, vector<1x64xf32>
    %101 = vector.broadcast %100 : vector<1x64xf32> to vector<16x64xf32>
    %102 = arith.addf %99, %101 : vector<16x64xf32>
    %cst_71 = arith.constant 5.000000e-01 : f32
    %103 = vector.broadcast %cst_71 : f32 to vector<16x64xf32>
    %104 = arith.mulf %103, %102 : vector<16x64xf32>
    %105 = arith.mulf %102, %102 : vector<16x64xf32>
    %106 = arith.mulf %105, %102 : vector<16x64xf32>
    %cst_72 = arith.constant 4.471500e-02 : f32
    %107 = vector.broadcast %cst_72 : f32 to vector<16x64xf32>
    %108 = arith.mulf %107, %106 : vector<16x64xf32>
    %109 = arith.addf %102, %108 : vector<16x64xf32>
    %cst_73 = arith.constant 0.797884583 : f32
    %110 = vector.broadcast %cst_73 : f32 to vector<16x64xf32>
    %111 = arith.mulf %110, %109 : vector<16x64xf32>
    %112 = math.tanh %111 : vector<16x64xf32>
    %cst_74 = arith.constant 1.000000e+00 : f32
    %113 = vector.broadcast %cst_74 : f32 to vector<16x64xf32>
    %114 = arith.addf %113, %112 : vector<16x64xf32>
    %115 = arith.mulf %104, %114 : vector<16x64xf32>
    %116 = arith.truncf %115 : vector<16x64xf32> to vector<16x64xbf16>
    %c0_75 = arith.constant 0 : index
    %c0_76 = arith.constant 0 : index
    %117 = vector.load %arg8[%c0_75, %c0_76] : memref<64x32xbf16, #tpu.memory_space<vmem>>, vector<64x32xbf16>
    %cst_77 = arith.constant dense<0.000000e+00> : vector<16x32xf32>
    %118 = tpu.matmul %116, %117, %cst_77 {dimension_numbers = #tpu.dot_dimension_numbers<[1], [0], [0], [1], [0, 0, 1, 1], [], []>} : vector<16x64xbf16>, vector<64x32xbf16>, vector<16x32xf32> -> vector<16x32xf32>
    %c0_78 = arith.constant 0 : index
    %c0_79 = arith.constant 0 : index
    %119 = vector.load %arg9[%c0_78, %c0_79] : memref<1x32xf32, #tpu.memory_space<vmem>>, vector<1x32xf32>
    %120 = vector.broadcast %119 : vector<1x32xf32> to vector<16x32xf32>
    %121 = arith.addf %118, %120 : vector<16x32xf32>
    %122 = arith.addf %121, %96 : vector<16x32xf32>
    %c0_80 = arith.constant 0 : index
    %c0_81 = arith.constant 0 : index
    %123 = vector.load %arg10[%c0_80, %c0_81] : memref<1x32xf32, #tpu.memory_space<vmem>>, vector<1x32xf32>
    %c0_82 = arith.constant 0 : index
    %c0_83 = arith.constant 0 : index
    %124 = vector.load %arg11[%c0_82, %c0_83] : memref<1x32xf32, #tpu.memory_space<vmem>>, vector<1x32xf32>
    %cst_84 = arith.constant dense<0.000000e+00> : vector<16xf32>
    %125 = vector.multi_reduction <add>, %122, %cst_84 [1] : vector<16x32xf32> to vector<16xf32>
    %126 = vector.shape_cast %125 : vector<16xf32> to vector<16x1xf32>
    %cst_85 = arith.constant 3.200000e+01 : f32
    %127 = vector.broadcast %cst_85 : f32 to vector<16x1xf32>
    %128 = arith.divf %126, %127 : vector<16x1xf32>
    %129 = vector.broadcast %128 : vector<16x1xf32> to vector<16x32xf32>
    %130 = arith.subf %122, %129 : vector<16x32xf32>
    %131 = arith.mulf %130, %130 : vector<16x32xf32>
    %cst_86 = arith.constant dense<0.000000e+00> : vector<16xf32>
    %132 = vector.multi_reduction <add>, %131, %cst_86 [1] : vector<16x32xf32> to vector<16xf32>
    %133 = vector.shape_cast %132 : vector<16xf32> to vector<16x1xf32>
    %cst_87 = arith.constant 3.200000e+01 : f32
    %134 = vector.broadcast %cst_87 : f32 to vector<16x1xf32>
    %135 = arith.divf %133, %134 : vector<16x1xf32>
    %136 = vector.broadcast %128 : vector<16x1xf32> to vector<16x32xf32>
    %137 = arith.subf %122, %136 : vector<16x32xf32>
    %cst_88 = arith.constant 9.99999974E-6 : f32
    %138 = vector.broadcast %cst_88 : f32 to vector<16x1xf32>
    %139 = arith.addf %135, %138 : vector<16x1xf32>
    %140 = math.rsqrt %139 : vector<16x1xf32>
    %141 = vector.broadcast %140 : vector<16x1xf32> to vector<16x32xf32>
    %142 = arith.mulf %137, %141 : vector<16x32xf32>
    %143 = vector.broadcast %123 : vector<1x32xf32> to vector<16x32xf32>
    %144 = arith.mulf %142, %143 : vector<16x32xf32>
    %145 = vector.broadcast %124 : vector<1x32xf32> to vector<16x32xf32>
    %146 = arith.addf %144, %145 : vector<16x32xf32>
    %147 = vector.shape_cast %146 : vector<16x32xf32> to vector<2x8x32xf32>
    %c0_89 = arith.constant 0 : index
    %c0_90 = arith.constant 0 : index
    %c0_91 = arith.constant 0 : index
    %148 = vector.load %arg12[%c0_89, %c0_90, %c0_91] : memref<2x8x32xf32, #tpu.memory_space<vmem>>, vector<2x8x32xf32>
    tpu.vector_store %arg12[%c0_89, %c0_90, %c0_91], %147 {strides = array<i32>} : memref<2x8x32xf32, #tpu.memory_space<vmem>>, vector<2x8x32xf32>,
    return
  }
  func.func @transform_0(%arg0: i32) -> (i32, i32, i32) {
    %c0_i32 = arith.constant 0 : i32
    %c0_i32_0 = arith.constant 0 : i32
    %c0_i32_1 = arith.constant 0 : i32
    return %arg0, %c0_i32, %c0_i32_0 : i32, i32, i32
  }
  func.func @transform_1(%arg0: i32) -> (i32, i32) {
    %c0_i32 = arith.constant 0 : i32
    %c0_i32_0 = arith.constant 0 : i32
    %c0_i32_1 = arith.constant 0 : i32
    return %c0_i32, %c0_i32_0 : i32, i32
  }
  func.func @transform_2(%arg0: i32) -> (i32, i32) {
    %c0_i32 = arith.constant 0 : i32
    %c0_i32_0 = arith.constant 0 : i32
    %c0_i32_1 = arith.constant 0 : i32
    return %c0_i32, %c0_i32_0 : i32, i32
  }
  func.func @transform_3(%arg0: i32) -> (i32, i32) {
    %c0_i32 = arith.constant 0 : i32
    %c0_i32_0 = arith.constant 0 : i32
    %c0_i32_1 = arith.constant 0 : i32
    return %c0_i32, %c0_i32_0 : i32, i32
  }
  func.func @transform_4(%arg0: i32) -> (i32, i32) {
    %c0_i32 = arith.constant 0 : i32
    %c0_i32_0 = arith.constant 0 : i32
    %c0_i32_1 = arith.constant 0 : i32
    return %c0_i32, %c0_i32_0 : i32, i32
  }
  func.func @transform_5(%arg0: i32) -> (i32, i32) {
    %c0_i32 = arith.constant 0 : i32
    %c0_i32_0 = arith.constant 0 : i32
    %c0_i32_1 = arith.constant 0 : i32
    return %c0_i32, %c0_i32_0 : i32, i32
  }
  func.func @transform_6(%arg0: i32) -> (i32, i32) {
    %c0_i32 = arith.constant 0 : i32
    %c0_i32_0 = arith.constant 0 : i32
    %c0_i32_1 = arith.constant 0 : i32
    return %c0_i32, %c0_i32_0 : i32, i32
  }
  func.func @transform_7(%arg0: i32) -> (i32, i32) {
    %c0_i32 = arith.constant 0 : i32
    %c0_i32_0 = arith.constant 0 : i32
    %c0_i32_1 = arith.constant 0 : i32
    return %c0_i32, %c0_i32_0 : i32, i32
  }
  func.func @transform_8(%arg0: i32) -> (i32, i32) {
    %c0_i32 = arith.constant 0 : i32
    %c0_i32_0 = arith.constant 0 : i32
    %c0_i32_1 = arith.constant 0 : i32
    return %c0_i32, %c0_i32_0 : i32, i32
  }
  func.func @transform_9(%arg0: i32) -> (i32, i32) {
    %c0_i32 = arith.constant 0 : i32
    %c0_i32_0 = arith.constant 0 : i32
    %c0_i32_1 = arith.constant 0 : i32
    return %c0_i32, %c0_i32_0 : i32, i32
  }
  func.func @transform_10(%arg0: i32) -> (i32, i32) {
    %c0_i32 = arith.constant 0 : i32
    %c0_i32_0 = arith.constant 0 : i32
    %c0_i32_1 = arith.constant 0 : i32
    return %c0_i32, %c0_i32_0 : i32, i32
  }
  func.func @transform_11(%arg0: i32) -> (i32, i32, i32) {
    %c0_i32 = arith.constant 0 : i32
    %c0_i32_0 = arith.constant 0 : i32
    %c0_i32_1 = arith.constant 0 : i32
    return %arg0, %c0_i32, %c0_i32_0 : i32, i32, i32
  }
}

module attributes {stable_mosaic.version = 11 : i64} {
  func.func @encoder_block_kernel(%arg0: i32, %arg1: memref<2x8x32xf32, #tpu.memory_space<vmem>>, %arg2: memref<32x96xbf16, #tpu.memory_space<vmem>>, %arg3: memref<32x32xbf16, #tpu.memory_space<vmem>>, %arg4: memref<1x32xf32, #tpu.memory_space<vmem>>, %arg5: memref<1x32xf32, #tpu.memory_space<vmem>>, %arg6: memref<32x64xbf16, #tpu.memory_space<vmem>>, %arg7: memref<1x64xf32, #tpu.memory_space<vmem>>, %arg8: memref<64x32xbf16, #tpu.memory_space<vmem>>, %arg9: memref<1x32xf32, #tpu.memory_space<vmem>>, %arg10: memref<1x32xf32, #tpu.memory_space<vmem>>, %arg11: memref<1x32xf32, #tpu.memory_space<vmem>>, %arg12: memref<2x8x32xf32, #tpu.memory_space<vmem>>, %arg13: memref<2x2x8x8xf32, #tpu.memory_space<vmem>>, %arg14: memref<16x32xbf16, #tpu.memory_space<vmem>>) attributes {dimension_semantics = [#tpu.dimension_semantics<parallel>], iteration_bounds = array<i64: 2>, scalar_prefetch = 0 : i64, scratch_operands = 2 : i64, tpu.core_type = #tpu.core_type<tc>, window_params = [{transform_indices = @transform_0, window_bounds = array<i64: 2, 8, 32>}, {pipeline_mode = #tpu.pipeline_mode<synchronous>, transform_indices = @transform_1, window_bounds = array<i64: 32, 96>}, {pipeline_mode = #tpu.pipeline_mode<synchronous>, transform_indices = @transform_2, window_bounds = array<i64: 32, 32>}, {pipeline_mode = #tpu.pipeline_mode<synchronous>, transform_indices = @transform_3, window_bounds = array<i64: 1, 32>}, {pipeline_mode = #tpu.pipeline_mode<synchronous>, transform_indices = @transform_4, window_bounds = array<i64: 1, 32>}, {pipeline_mode = #tpu.pipeline_mode<synchronous>, transform_indices = @transform_5, window_bounds = array<i64: 32, 64>}, {pipeline_mode = #tpu.pipeline_mode<synchronous>, transform_indices = @transform_6, window_bounds = array<i64: 1, 64>}, {pipeline_mode = #tpu.pipeline_mode<synchronous>, transform_indices = @transform_7, window_bounds = array<i64: 64, 32>}, {pipeline_mode = #tpu.pipeline_mode<synchronous>, transform_indices = @transform_8, window_bounds = array<i64: 1, 32>}, {pipeline_mode = #tpu.pipeline_mode<synchronous>, transform_indices = @transform_9, window_bounds = array<i64: 1, 32>}, {pipeline_mode = #tpu.pipeline_mode<synchronous>, transform_indices = @transform_10, window_bounds = array<i64: 1, 32>}, {transform_indices = @transform_11, window_bounds = array<i64: 2, 8, 32>}]} {
    %c0 = arith.constant 0 : index
    %c0_0 = arith.constant 0 : index
    %c0_1 = arith.constant 0 : index
    %0 = vector.load %arg1[%c0, %c0_0, %c0_1] : memref<2x8x32xf32, #tpu.memory_space<vmem>>, vector<2x8x32xf32>
    %1 = vector.shape_cast %0 : vector<2x8x32xf32> to vector<16x32xf32>
    %2 = arith.truncf %1 : vector<16x32xf32> to vector<16x32xbf16>
    %c0_2 = arith.constant 0 : index
    %c0_3 = arith.constant 0 : index
    %3 = vector.load %arg2[%c0_2, %c0_3] : memref<32x96xbf16, #tpu.memory_space<vmem>>, vector<32x96xbf16>
    %cst = arith.constant dense<0.000000e+00> : vector<16x96xf32>
    %4 = tpu.matmul %2, %3, %cst {dimension_numbers = #tpu.dot_dimension_numbers<[1], [0], [0], [1], [0, 0, 1, 1], [], []>} : vector<16x32xbf16>, vector<32x96xbf16>, vector<16x96xf32> -> vector<16x96xf32>
    %5 = vector.extract_strided_slice %4 {offsets = [0, 0], sizes = [16, 32], strides = [1, 1]} : vector<16x96xf32> to vector<16x32xf32>
    %cst_4 = arith.constant 2.500000e-01 : f32
    %6 = vector.broadcast %cst_4 : f32 to vector<16x32xf32>
    %7 = arith.mulf %5, %6 : vector<16x32xf32>
    %8 = arith.truncf %7 : vector<16x32xf32> to vector<16x32xbf16>
    %9 = vector.shape_cast %8 : vector<16x32xbf16> to vector<2x8x32xbf16>
    %10 = vector.extract_strided_slice %4 {offsets = [0, 32], sizes = [16, 32], strides = [1, 1]} : vector<16x96xf32> to vector<16x32xf32>
    %11 = arith.truncf %10 : vector<16x32xf32> to vector<16x32xbf16>
    %12 = vector.shape_cast %11 : vector<16x32xbf16> to vector<2x8x32xbf16>
    %13 = vector.extract_strided_slice %4 {offsets = [0, 64], sizes = [16, 32], strides = [1, 1]} : vector<16x96xf32> to vector<16x32xf32>
    %14 = arith.truncf %13 : vector<16x32xf32> to vector<16x32xbf16>
    %15 = vector.shape_cast %14 : vector<16x32xbf16> to vector<2x8x32xbf16>
    %16 = vector.extract_strided_slice %9 {offsets = [0, 0, 0], sizes = [2, 8, 16], strides = [1, 1, 1]} : vector<2x8x32xbf16> to vector<2x8x16xbf16>
    %17 = vector.extract_strided_slice %12 {offsets = [0, 0, 0], sizes = [2, 8, 16], strides = [1, 1, 1]} : vector<2x8x32xbf16> to vector<2x8x16xbf16>
    "tpu.trace_start"() <{level = 10 : i32, message = "bqd,bkd->bqk"}> : () -> ()
    %cst_5 = arith.constant dense<0.000000e+00> : vector<2x8x8xf32>
    %18 = tpu.matmul %16, %17, %cst_5 {dimension_numbers = #tpu.dot_dimension_numbers<[2], [2], [1], [1], [0, 0, 0, 1, 1, 1], [0], [0]>} : vector<2x8x16xbf16>, vector<2x8x16xbf16>, vector<2x8x8xf32> -> vector<2x8x8xf32>
    "tpu.trace_stop"() : () -> ()
    %c0_6 = arith.constant 0 : index
    %c0_7 = arith.constant 0 : index
    %c0_8 = arith.constant 0 : index
    %c0_9 = arith.constant 0 : index
    %19 = vector.load %arg13[%c0_6, %c0_7, %c0_8, %c0_9] : memref<2x2x8x8xf32, #tpu.memory_space<vmem>>, vector<1x2x8x8xf32>
    %20 = vector.shape_cast %19 : vector<1x2x8x8xf32> to vector<2x8x8xf32>
    %21 = vector.shape_cast %18 : vector<2x8x8xf32> to vector<1x2x8x8xf32>
    tpu.vector_store %arg13[%c0_6, %c0_7, %c0_8, %c0_9], %21 {strides = array<i32>} : memref<2x2x8x8xf32, #tpu.memory_space<vmem>>, vector<1x2x8x8xf32>,
    %22 = vector.extract_strided_slice %9 {offsets = [0, 0, 16], sizes = [2, 8, 16], strides = [1, 1, 1]} : vector<2x8x32xbf16> to vector<2x8x16xbf16>
    %23 = vector.extract_strided_slice %12 {offsets = [0, 0, 16], sizes = [2, 8, 16], strides = [1, 1, 1]} : vector<2x8x32xbf16> to vector<2x8x16xbf16>
    "tpu.trace_start"() <{level = 10 : i32, message = "bqd,bkd->bqk"}> : () -> ()
    %cst_10 = arith.constant dense<0.000000e+00> : vector<2x8x8xf32>
    %24 = tpu.matmul %22, %23, %cst_10 {dimension_numbers = #tpu.dot_dimension_numbers<[2], [2], [1], [1], [0, 0, 0, 1, 1, 1], [0], [0]>} : vector<2x8x16xbf16>, vector<2x8x16xbf16>, vector<2x8x8xf32> -> vector<2x8x8xf32>
    "tpu.trace_stop"() : () -> ()
    %c1 = arith.constant 1 : index
    %c0_11 = arith.constant 0 : index
    %c0_12 = arith.constant 0 : index
    %c0_13 = arith.constant 0 : index
    %25 = vector.load %arg13[%c1, %c0_11, %c0_12, %c0_13] : memref<2x2x8x8xf32, #tpu.memory_space<vmem>>, vector<1x2x8x8xf32>
    %26 = vector.shape_cast %25 : vector<1x2x8x8xf32> to vector<2x8x8xf32>
    %27 = vector.shape_cast %24 : vector<2x8x8xf32> to vector<1x2x8x8xf32>
    tpu.vector_store %arg13[%c1, %c0_11, %c0_12, %c0_13], %27 {strides = array<i32>} : memref<2x2x8x8xf32, #tpu.memory_space<vmem>>, vector<1x2x8x8xf32>,
    %c0_14 = arith.constant 0 : index
    %c0_15 = arith.constant 0 : index
    %c0_16 = arith.constant 0 : index
    %c0_17 = arith.constant 0 : index
    %28 = vector.load %arg13[%c0_14, %c0_15, %c0_16, %c0_17] : memref<2x2x8x8xf32, #tpu.memory_space<vmem>>, vector<1x2x8x8xf32>
    %29 = vector.shape_cast %28 : vector<1x2x8x8xf32> to vector<2x8x8xf32>
    %c1_18 = arith.constant 1 : index
    %c0_19 = arith.constant 0 : index
    %c0_20 = arith.constant 0 : index
    %c0_21 = arith.constant 0 : index
    %30 = vector.load %arg13[%c1_18, %c0_19, %c0_20, %c0_21] : memref<2x2x8x8xf32, #tpu.memory_space<vmem>>, vector<1x2x8x8xf32>
    %31 = vector.shape_cast %30 : vector<1x2x8x8xf32> to vector<2x8x8xf32>
    %32 = arith.maximumf %29, %31 : vector<2x8x8xf32>
    %cst_22 = arith.constant 0.000000e+00 : f32
    %33 = vector.broadcast %cst_22 : f32 to vector<2x8x8xf32>
    %c0_23 = arith.constant 0 : index
    %c0_24 = arith.constant 0 : index
    %c0_25 = arith.constant 0 : index
    %c0_26 = arith.constant 0 : index
    %34 = vector.load %arg13[%c0_23, %c0_24, %c0_25, %c0_26] : memref<2x2x8x8xf32, #tpu.memory_space<vmem>>, vector<1x2x8x8xf32>
    %35 = vector.shape_cast %34 : vector<1x2x8x8xf32> to vector<2x8x8xf32>
    %36 = arith.subf %35, %32 : vector<2x8x8xf32>
    %37 = math.exp %36 : vector<2x8x8xf32>
    %c0_27 = arith.constant 0 : index
    %c0_28 = arith.constant 0 : index
    %c0_29 = arith.constant 0 : index
    %c0_30 = arith.constant 0 : index
    %38 = vector.load %arg13[%c0_27, %c0_28, %c0_29, %c0_30] : memref<2x2x8x8xf32, #tpu.memory_space<vmem>>, vector<1x2x8x8xf32>
    %39 = vector.shape_cast %38 : vector<1x2x8x8xf32> to vector<2x8x8xf32>
    %40 = vector.shape_cast %37 : vector<2x8x8xf32> to vector<1x2x8x8xf32>
    tpu.vector_store %arg13[%c0_27, %c0_28, %c0_29, %c0_30], %40 {strides = array<i32>} : memref<2x2x8x8xf32, #tpu.memory_space<vmem>>, vector<1x2x8x8xf32>,
    %41 = arith.addf %33, %37 : vector<2x8x8xf32>
    %c1_31 = arith.constant 1 : index
    %c0_32 = arith.constant 0 : index
    %c0_33 = arith.constant 0 : index
    %c0_34 = arith.constant 0 : index
    %42 = vector.load %arg13[%c1_31, %c0_32, %c0_33, %c0_34] : memref<2x2x8x8xf32, #tpu.memory_space<vmem>>, vector<1x2x8x8xf32>
    %43 = vector.shape_cast %42 : vector<1x2x8x8xf32> to vector<2x8x8xf32>
    %44 = arith.subf %43, %32 : vector<2x8x8xf32>
    %45 = math.exp %44 : vector<2x8x8xf32>
    %c1_35 = arith.constant 1 : index
    %c0_36 = arith.constant 0 : index
    %c0_37 = arith.constant 0 : index
    %c0_38 = arith.constant 0 : index
    %46 = vector.load %arg13[%c1_35, %c0_36, %c0_37, %c0_38] : memref<2x2x8x8xf32, #tpu.memory_space<vmem>>, vector<1x2x8x8xf32>
    %47 = vector.shape_cast %46 : vector<1x2x8x8xf32> to vector<2x8x8xf32>
    %48 = vector.shape_cast %45 : vector<2x8x8xf32> to vector<1x2x8x8xf32>
    tpu.vector_store %arg13[%c1_35, %c0_36, %c0_37, %c0_38], %48 {strides = array<i32>} : memref<2x2x8x8xf32, #tpu.memory_space<vmem>>, vector<1x2x8x8xf32>,
    %49 = arith.addf %41, %45 : vector<2x8x8xf32>
    %50 = tpu.reciprocal %49 {approx = true} : vector<2x8x8xf32> -> vector<2x8x8xf32>
    %c0_39 = arith.constant 0 : index
    %c0_40 = arith.constant 0 : index
    %c0_41 = arith.constant 0 : index
    %c0_42 = arith.constant 0 : index
    %51 = vector.load %arg13[%c0_39, %c0_40, %c0_41, %c0_42] : memref<2x2x8x8xf32, #tpu.memory_space<vmem>>, vector<1x2x8x8xf32>
    %52 = vector.shape_cast %51 : vector<1x2x8x8xf32> to vector<2x8x8xf32>
    %53 = arith.mulf %52, %50 : vector<2x8x8xf32>
    %54 = arith.truncf %53 : vector<2x8x8xf32> to vector<2x8x8xbf16>
    %55 = vector.extract_strided_slice %15 {offsets = [0, 0, 0], sizes = [2, 8, 16], strides = [1, 1, 1]} : vector<2x8x32xbf16> to vector<2x8x16xbf16>
    "tpu.trace_start"() <{level = 10 : i32, message = "bqk,bkd->bqd"}> : () -> ()
    %cst_43 = arith.constant dense<0.000000e+00> : vector<2x8x16xf32>
    %56 = tpu.matmul %54, %55, %cst_43 {dimension_numbers = #tpu.dot_dimension_numbers<[2], [1], [1], [2], [0, 0, 0, 1, 1, 2], [0], [0]>} : vector<2x8x8xbf16>, vector<2x8x16xbf16>, vector<2x8x16xf32> -> vector<2x8x16xf32>
    "tpu.trace_stop"() : () -> ()
    %57 = vector.shape_cast %56 : vector<2x8x16xf32> to vector<16x16xf32>
    %58 = arith.truncf %57 : vector<16x16xf32> to vector<16x16xbf16>
    %c0_44 = arith.constant 0 : index
    %c0_45 = arith.constant 0 : index
    %59 = vector.load %arg14[%c0_44, %c0_45] : memref<16x32xbf16, #tpu.memory_space<vmem>>, vector<16x16xbf16>
    tpu.vector_store %arg14[%c0_44, %c0_45], %58 {strides = array<i32>} : memref<16x32xbf16, #tpu.memory_space<vmem>>, vector<16x16xbf16>,
    %c1_46 = arith.constant 1 : index
    %c0_47 = arith.constant 0 : index
    %c0_48 = arith.constant 0 : index
    %c0_49 = arith.constant 0 : index
    %60 = vector.load %arg13[%c1_46, %c0_47, %c0_48, %c0_49] : memref<2x2x8x8xf32, #tpu.memory_space<vmem>>, vector<1x2x8x8xf32>
    %61 = vector.shape_cast %60 : vector<1x2x8x8xf32> to vector<2x8x8xf32>
    %62 = arith.mulf %61, %50 : vector<2x8x8xf32>
    %63 = arith.truncf %62 : vector<2x8x8xf32> to vector<2x8x8xbf16>
    %64 = vector.extract_strided_slice %15 {offsets = [0, 0, 16], sizes = [2, 8, 16], strides = [1, 1, 1]} : vector<2x8x32xbf16> to vector<2x8x16xbf16>
    "tpu.trace_start"() <{level = 10 : i32, message = "bqk,bkd->bqd"}> : () -> ()
    %cst_50 = arith.constant dense<0.000000e+00> : vector<2x8x16xf32>
    %65 = tpu.matmul %63, %64, %cst_50 {dimension_numbers = #tpu.dot_dimension_numbers<[2], [1], [1], [2], [0, 0, 0, 1, 1, 2], [0], [0]>} : vector<2x8x8xbf16>, vector<2x8x16xbf16>, vector<2x8x16xf32> -> vector<2x8x16xf32>
    "tpu.trace_stop"() : () -> ()
    %66 = vector.shape_cast %65 : vector<2x8x16xf32> to vector<16x16xf32>
    %67 = arith.truncf %66 : vector<16x16xf32> to vector<16x16xbf16>
    %c0_51 = arith.constant 0 : index
    %c16 = arith.constant 16 : index
    %68 = vector.load %arg14[%c0_51, %c16] : memref<16x32xbf16, #tpu.memory_space<vmem>>, vector<16x16xbf16>
    tpu.vector_store %arg14[%c0_51, %c16], %67 {strides = array<i32>} : memref<16x32xbf16, #tpu.memory_space<vmem>>, vector<16x16xbf16>,
    %c0_52 = arith.constant 0 : index
    %c0_53 = arith.constant 0 : index
    %69 = vector.load %arg14[%c0_52, %c0_53] : memref<16x32xbf16, #tpu.memory_space<vmem>>, vector<16x32xbf16>
    %c0_54 = arith.constant 0 : index
    %c0_55 = arith.constant 0 : index
    %70 = vector.load %arg3[%c0_54, %c0_55] : memref<32x32xbf16, #tpu.memory_space<vmem>>, vector<32x32xbf16>
    %cst_56 = arith.constant dense<0.000000e+00> : vector<16x32xf32>
    %71 = tpu.matmul %69, %70, %cst_56 {dimension_numbers = #tpu.dot_dimension_numbers<[1], [0], [0], [1], [0, 0, 1, 1], [], []>} : vector<16x32xbf16>, vector<32x32xbf16>, vector<16x32xf32> -> vector<16x32xf32>
    %72 = arith.addf %71, %1 : vector<16x32xf32>
    %c0_57 = arith.constant 0 : index
    %c0_58 = arith.constant 0 : index
    %73 = vector.load %arg4[%c0_57, %c0_58] : memref<1x32xf32, #tpu.memory_space<vmem>>, vector<1x32xf32>
    %c0_59 = arith.constant 0 : index
    %c0_60 = arith.constant 0 : index
    %74 = vector.load %arg5[%c0_59, %c0_60] : memref<1x32xf32, #tpu.memory_space<vmem>>, vector<1x32xf32>
    %cst_61 = arith.constant dense<0.000000e+00> : vector<16xf32>
    %75 = vector.multi_reduction <add>, %72, %cst_61 [1] : vector<16x32xf32> to vector<16xf32>
    %76 = vector.shape_cast %75 : vector<16xf32> to vector<16x1xf32>
    %cst_62 = arith.constant 3.200000e+01 : f32
    %77 = vector.broadcast %cst_62 : f32 to vector<16x1xf32>
    %78 = arith.divf %76, %77 : vector<16x1xf32>
    %79 = vector.broadcast %78 : vector<16x1xf32> to vector<16x32xf32>
    %80 = arith.subf %72, %79 : vector<16x32xf32>
    %81 = arith.mulf %80, %80 : vector<16x32xf32>
    %cst_63 = arith.constant dense<0.000000e+00> : vector<16xf32>
    %82 = vector.multi_reduction <add>, %81, %cst_63 [1] : vector<16x32xf32> to vector<16xf32>
    %83 = vector.shape_cast %82 : vector<16xf32> to vector<16x1xf32>
    %cst_64 = arith.constant 3.200000e+01 : f32
    %84 = vector.broadcast %cst_64 : f32 to vector<16x1xf32>
    %85 = arith.divf %83, %84 : vector<16x1xf32>
    %86 = vector.broadcast %78 : vector<16x1xf32> to vector<16x32xf32>
    %87 = arith.subf %72, %86 : vector<16x32xf32>
    %cst_65 = arith.constant 9.99999974E-6 : f32
    %88 = vector.broadcast %cst_65 : f32 to vector<16x1xf32>
    %89 = arith.addf %85, %88 : vector<16x1xf32>
    %90 = math.rsqrt %89 : vector<16x1xf32>
    %91 = vector.broadcast %90 : vector<16x1xf32> to vector<16x32xf32>
    %92 = arith.mulf %87, %91 : vector<16x32xf32>
    %93 = vector.broadcast %73 : vector<1x32xf32> to vector<16x32xf32>
    %94 = arith.mulf %92, %93 : vector<16x32xf32>
    %95 = vector.broadcast %74 : vector<1x32xf32> to vector<16x32xf32>
    %96 = arith.addf %94, %95 : vector<16x32xf32>
    %97 = arith.truncf %96 : vector<16x32xf32> to vector<16x32xbf16>
    %c0_66 = arith.constant 0 : index
    %c0_67 = arith.constant 0 : index
    %98 = vector.load %arg6[%c0_66, %c0_67] : memref<32x64xbf16, #tpu.memory_space<vmem>>, vector<32x64xbf16>
    %cst_68 = arith.constant dense<0.000000e+00> : vector<16x64xf32>
    %99 = tpu.matmul %97, %98, %cst_68 {dimension_numbers = #tpu.dot_dimension_numbers<[1], [0], [0], [1], [0, 0, 1, 1], [], []>} : vector<16x32xbf16>, vector<32x64xbf16>, vector<16x64xf32> -> vector<16x64xf32>
    %c0_69 = arith.constant 0 : index
    %c0_70 = arith.constant 0 : index
    %100 = vector.load %arg7[%c0_69, %c0_70] : memref<1x64xf32, #tpu.memory_space<vmem>>, vector<1x64xf32>
    %101 = vector.broadcast %100 : vector<1x64xf32> to vector<16x64xf32>
    %102 = arith.addf %99, %101 : vector<16x64xf32>
    %cst_71 = arith.constant 5.000000e-01 : f32
    %103 = vector.broadcast %cst_71 : f32 to vector<16x64xf32>
    %104 = arith.mulf %103, %102 : vector<16x64xf32>
    %105 = arith.mulf %102, %102 : vector<16x64xf32>
    %106 = arith.mulf %105, %102 : vector<16x64xf32>
    %cst_72 = arith.constant 4.471500e-02 : f32
    %107 = vector.broadcast %cst_72 : f32 to vector<16x64xf32>
    %108 = arith.mulf %107, %106 : vector<16x64xf32>
    %109 = arith.addf %102, %108 : vector<16x64xf32>
    %cst_73 = arith.constant 0.797884583 : f32
    %110 = vector.broadcast %cst_73 : f32 to vector<16x64xf32>
    %111 = arith.mulf %110, %109 : vector<16x64xf32>
    %112 = math.tanh %111 : vector<16x64xf32>
    %cst_74 = arith.constant 1.000000e+00 : f32
    %113 = vector.broadcast %cst_74 : f32 to vector<16x64xf32>
    %114 = arith.addf %113, %112 : vector<16x64xf32>
    %115 = arith.mulf %104, %114 : vector<16x64xf32>
    %116 = arith.truncf %115 : vector<16x64xf32> to vector<16x64xbf16>
    %c0_75 = arith.constant 0 : index
    %c0_76 = arith.constant 0 : index
    %117 = vector.load %arg8[%c0_75, %c0_76] : memref<64x32xbf16, #tpu.memory_space<vmem>>, vector<64x32xbf16>
    %cst_77 = arith.constant dense<0.000000e+00> : vector<16x32xf32>
    %118 = tpu.matmul %116, %117, %cst_77 {dimension_numbers = #tpu.dot_dimension_numbers<[1], [0], [0], [1], [0, 0, 1, 1], [], []>} : vector<16x64xbf16>, vector<64x32xbf16>, vector<16x32xf32> -> vector<16x32xf32>
    %c0_78 = arith.constant 0 : index
    %c0_79 = arith.constant 0 : index
    %119 = vector.load %arg9[%c0_78, %c0_79] : memref<1x32xf32, #tpu.memory_space<vmem>>, vector<1x32xf32>
    %120 = vector.broadcast %119 : vector<1x32xf32> to vector<16x32xf32>
    %121 = arith.addf %118, %120 : vector<16x32xf32>
    %122 = arith.addf %121, %96 : vector<16x32xf32>
    %c0_80 = arith.constant 0 : index
    %c0_81 = arith.constant 0 : index
    %123 = vector.load %arg10[%c0_80, %c0_81] : memref<1x32xf32, #tpu.memory_space<vmem>>, vector<1x32xf32>
    %c0_82 = arith.constant 0 : index
    %c0_83 = arith.constant 0 : index
    %124 = vector.load %arg11[%c0_82, %c0_83] : memref<1x32xf32, #tpu.memory_space<vmem>>, vector<1x32xf32>
    %cst_84 = arith.constant dense<0.000000e+00> : vector<16xf32>
    %125 = vector.multi_reduction <add>, %122, %cst_84 [1] : vector<16x32xf32> to vector<16xf32>
    %126 = vector.shape_cast %125 : vector<16xf32> to vector<16x1xf32>
    %cst_85 = arith.constant 3.200000e+01 : f32
    %127 = vector.broadcast %cst_85 : f32 to vector<16x1xf32>
    %128 = arith.divf %126, %127 : vector<16x1xf32>
    %129 = vector.broadcast %128 : vector<16x1xf32> to vector<16x32xf32>
    %130 = arith.subf %122, %129 : vector<16x32xf32>
    %131 = arith.mulf %130, %130 : vector<16x32xf32>
    %cst_86 = arith.constant dense<0.000000e+00> : vector<16xf32>
    %132 = vector.multi_reduction <add>, %131, %cst_86 [1] : vector<16x32xf32> to vector<16xf32>
    %133 = vector.shape_cast %132 : vector<16xf32> to vector<16x1xf32>
    %cst_87 = arith.constant 3.200000e+01 : f32
    %134 = vector.broadcast %cst_87 : f32 to vector<16x1xf32>
    %135 = arith.divf %133, %134 : vector<16x1xf32>
    %136 = vector.broadcast %128 : vector<16x1xf32> to vector<16x32xf32>
    %137 = arith.subf %122, %136 : vector<16x32xf32>
    %cst_88 = arith.constant 9.99999974E-6 : f32
    %138 = vector.broadcast %cst_88 : f32 to vector<16x1xf32>
    %139 = arith.addf %135, %138 : vector<16x1xf32>
    %140 = math.rsqrt %139 : vector<16x1xf32>
    %141 = vector.broadcast %140 : vector<16x1xf32> to vector<16x32xf32>
    %142 = arith.mulf %137, %141 : vector<16x32xf32>
    %143 = vector.broadcast %123 : vector<1x32xf32> to vector<16x32xf32>
    %144 = arith.mulf %142, %143 : vector<16x32xf32>
    %145 = vector.broadcast %124 : vector<1x32xf32> to vector<16x32xf32>
    %146 = arith.addf %144, %145 : vector<16x32xf32>
    %147 = vector.shape_cast %146 : vector<16x32xf32> to vector<2x8x32xf32>
    %c0_89 = arith.constant 0 : index
    %c0_90 = arith.constant 0 : index
    %c0_91 = arith.constant 0 : index
    %148 = vector.load %arg12[%c0_89, %c0_90, %c0_91] : memref<2x8x32xf32, #tpu.memory_space<vmem>>, vector<2x8x32xf32>
    tpu.vector_store %arg12[%c0_89, %c0_90, %c0_91], %147 {strides = array<i32>} : memref<2x8x32xf32, #tpu.memory_space<vmem>>, vector<2x8x32xf32>,
    return
  }
  func.func @transform_0(%arg0: i32) -> (i32, i32, i32) {
    %c0_i32 = arith.constant 0 : i32
    %c0_i32_0 = arith.constant 0 : i32
    %c0_i32_1 = arith.constant 0 : i32
    return %arg0, %c0_i32, %c0_i32_0 : i32, i32, i32
  }
  func.func @transform_1(%arg0: i32) -> (i32, i32) {
    %c0_i32 = arith.constant 0 : i32
    %c0_i32_0 = arith.constant 0 : i32
    %c0_i32_1 = arith.constant 0 : i32
    return %c0_i32, %c0_i32_0 : i32, i32
  }
  func.func @transform_2(%arg0: i32) -> (i32, i32) {
    %c0_i32 = arith.constant 0 : i32
    %c0_i32_0 = arith.constant 0 : i32
    %c0_i32_1 = arith.constant 0 : i32
    return %c0_i32, %c0_i32_0 : i32, i32
  }
  func.func @transform_3(%arg0: i32) -> (i32, i32) {
    %c0_i32 = arith.constant 0 : i32
    %c0_i32_0 = arith.constant 0 : i32
    %c0_i32_1 = arith.constant 0 : i32
    return %c0_i32, %c0_i32_0 : i32, i32
  }
  func.func @transform_4(%arg0: i32) -> (i32, i32) {
    %c0_i32 = arith.constant 0 : i32
    %c0_i32_0 = arith.constant 0 : i32
    %c0_i32_1 = arith.constant 0 : i32
    return %c0_i32, %c0_i32_0 : i32, i32
  }
  func.func @transform_5(%arg0: i32) -> (i32, i32) {
    %c0_i32 = arith.constant 0 : i32
    %c0_i32_0 = arith.constant 0 : i32
    %c0_i32_1 = arith.constant 0 : i32
    return %c0_i32, %c0_i32_0 : i32, i32
  }
  func.func @transform_6(%arg0: i32) -> (i32, i32) {
    %c0_i32 = arith.constant 0 : i32
    %c0_i32_0 = arith.constant 0 : i32
    %c0_i32_1 = arith.constant 0 : i32
    return %c0_i32, %c0_i32_0 : i32, i32
  }
  func.func @transform_7(%arg0: i32) -> (i32, i32) {
    %c0_i32 = arith.constant 0 : i32
    %c0_i32_0 = arith.constant 0 : i32
    %c0_i32_1 = arith.constant 0 : i32
    return %c0_i32, %c0_i32_0 : i32, i32
  }
  func.func @transform_8(%arg0: i32) -> (i32, i32) {
    %c0_i32 = arith.constant 0 : i32
    %c0_i32_0 = arith.constant 0 : i32
    %c0_i32_1 = arith.constant 0 : i32
    return %c0_i32, %c0_i32_0 : i32, i32
  }
  func.func @transform_9(%arg0: i32) -> (i32, i32) {
    %c0_i32 = arith.constant 0 : i32
    %c0_i32_0 = arith.constant 0 : i32
    %c0_i32_1 = arith.constant 0 : i32
    return %c0_i32, %c0_i32_0 : i32, i32
  }
  func.func @transform_10(%arg0: i32) -> (i32, i32) {
    %c0_i32 = arith.constant 0 : i32
    %c0_i32_0 = arith.constant 0 : i32
    %c0_i32_1 = arith.constant 0 : i32
    return %c0_i32, %c0_i32_0 : i32, i32
  }
  func.func @transform_11(%arg0: i32) -> (i32, i32, i32) {
    %c0_i32 = arith.constant 0 : i32
    %c0_i32_0 = arith.constant 0 : i32
    %c0_i32_1 = arith.constant 0 : i32
    return %arg0, %c0_i32, %c0_i32_0 : i32, i32, i32
  }
}

</mosaic_0001>

<bundles_post_ra>
// kernel: tpu_custom_call.1
= control target key start
LH: loop header
LB: loop body
LE: loop exit
PB: predicated region body
PF: predicated region fallthrough
CT: control target
= control target key end

     0   :  { %16 = vsyncpa [#allocation5], 0  ;;  %s1684_s0 = inlined_call_operand.vmem [shape: f32[4,8,32], index: 0, kind: input, shape index: {}]   ;;  %s1685_s1 = inlined_call_operand.vmem [shape: bf16[32,96], index: 1, kind: input, shape index: {}]   ;;  %s1686_s2 = inlined_call_operand.hbm [shape: bf16[32,32], index: 2, kind: input, shape index: {}]   ;;  %s1687_s3 = inlined_call_operand.vmem [shape: f32[1,32], index: 3, kind: input, shape index: {}]   ;;  %s1688_s4 = inlined_call_operand.vmem [shape: f32[1,32], index: 4, kind: input, shape index: {}]   ;;  %s1689_s5 = inlined_call_operand.hbm [shape: bf16[32,64], index: 5, kind: input, shape index: {}]   ;;  %s1690_s6 = inlined_call_operand.vmem [shape: f32[1,64], index: 6, kind: input, shape index: {}]   ;;  %s1691_s7 = inlined_call_operand.vmem [shape: bf16[64,32], index: 7, kind: input, shape index: {}]   ;;  %s1692_s8 = inlined_call_operand.vmem [shape: f32[1,32], index: 8, kind: input, shape index: {}]   ;;  %s1693_s9 = inlined_call_operand.vmem [shape: f32[1,32], index: 9, kind: input, shape index: {}]   ;;  %s1694_s10 = inlined_call_operand.vmem [shape: f32[1,32], index: 10, kind: input, shape index: {}]   ;;  %s1695_s11 = inlined_call_operand.hbm [shape: f32[4,8,32], index: 11, kind: output, shape index: {}]  }
   0x1   :  { %17 = vsyncpa [#allocation8], 0 }
   0x2   :  { %18 = vsyncpa [#allocation6], 0 }
   0x3   :  { %20 = vsyncpa [#allocation6 + $0x1], 0  ;;  %s1484_s17 = smov 0   ;;  %s1486_s18 = smov 0  }
   0x4   :  { %s1488_s19 = smov 0   ;;  %s1490_s20 = smov 0  }
   0x5 LB: > { %1697 = sst [smem:[#allocation13_spill]] %s1405_s19  ;;  %s1505_s21 = sadd.s32 4294967295, %s1409_s20   ;;  %s1409_s20 = sphi %s1490_s20, %s1706_s20   ;;  %s1405_s19 = sphi %s1488_s19, %s1703_s19   ;;  %s1401_s18 = sphi %s1486_s18, %s1705_s18   ;;  %s1397_s17 = sphi %s1484_s17, %s1704_s17  }
   0x6   : > { %s1092_s22 = sadd.s32 4294967294, %s1409_s20   ;;  %s1509_s23 = sadd.s32 1, %s1409_s20  }
   0x7   : > { %s269_s24 = sadd.s32 1, %s1405_s19  ;;  %s266_s25 = ssub.s32 %s1409_s20, %s1509_s23 }
   0x8   : > { %p279_p0 = scmp.ne.s32.totalorder %s1405_s19, %s1401_s18  ;;  %p267_p1 = scmp.eq.s32.totalorder %s266_s25, 0 }
   0x9   : > { %p280_p2 = scmp.eq.s32.totalorder %s1505_s21, 1  ;;  %p285_p3 = scmp.ne.s32.totalorder %s1401_s18, %s1397_s17 }
   0xa   : > { %p286_p4 = scmp.eq.s32.totalorder %s1092_s22, 1  ;;  %p1093_p7 = scmp.ge.s32.totalorder %s1409_s20, 1 }
   0xb   : > { %s1520_s26 = scalar_select %p267_p1, %s1405_s19, %s269_s24  }
   0xc   : > { %p1522_p5 = por %p280_p2, %p279_p0  ;;  %p1526_p6 = por %p286_p4, %p285_p3 }
   0xd   : > { %1698 = sst [smem:[#allocation14_spill]] %s1520_s26  ;;  %p293_p8 = scmp.lt.s32.totalorder %s1409_s20, 3 }
   0xe   : > { %p1197_p9 = scmp.eq.s32.totalorder %s1505_s21, 0  ;;  %s307_s13 = sshll.u32 %s1686_s2, 4  ;;  %s308_s13 = int_to_ptr.hbm [resolvable:$true] %s307_s13 }
   0xf   : > { %p1533_p10 = pnand %p1093_p7, %p293_p8  ;;  %s1411_s14 = smov [#allocation4]  }
  0x10   : > { %s309_s15 = sshll.u32 %s1411_s14, 4  ;;  %s327_s24 = sshll.u32 %s1689_s5, 4  ;;  %s310_s15 = int_to_ptr.vmem [resolvable:$true] %s309_s15  ;;  %s328_s24 = int_to_ptr.hbm [resolvable:$true] %s327_s24 }
  0x11   : > { %p1186_p11 = pneg %p1533_p10  ;;  %s1412_s25 = smov 64  }
  0x12   : > { %s1413_s26 = smov 4   ;;  %s1414_s19 = smov [#allocation7]  }
  0x13   : > { %p1187_p12 = pnand %p1197_p9, %p1186_p11  ;;  %s329_s30 = sshll.u32 %s1414_s19, 4  ;;  %s330_s30 = int_to_ptr.vmem [resolvable:$true] %s329_s30 }
  0x14   : > { %369 = sbr.rel (%p1533_p10) target bundleno = 1714 (0x6b2), region = 64 }
  0x15   : > { %1189 = dma.hbm_to_vmem [thread:$0]  (!%p1187_p12), %s308_s13, 256, %s310_s15, [#allocation5], %s1412_s25, %s1412_s25, %s1413_s26  }
  0x16   : > { %1192 = dma.hbm_to_vmem [thread:$0]  (!%p1187_p12), %s328_s24, 256, %s330_s30, [#allocation8], %s1412_s25, %s1412_s25, %s1413_s26  }
  0x19   : > { %1384 = dma.done.wait (%p1197_p9), [#allocation5], 256  }
  0x1a   : > { %1386 = vsyncadd (%p1197_p9), [#allocation5], 4294967040 }
  0x1b   : > { %1388 = dma.done.wait (%p1197_p9), [#allocation8], 256  }
  0x1c   : > { %1390 = vsyncadd (%p1197_p9), [#allocation8], 4294967040  ;;  %s1101_s12 = sshll.u32 %s1505_s21, 1  ;;  %v1165_v0 = vld [vmem:[%s1685_s1 + $0x8] sm:$0xff]  ;;  %v1164_v1 = vld [vmem:[%s1685_s1] sm:$0xff]  ;;  %vm442_vm0 = vcmask 261120  }
  0x1d   : > { %p416_p13 = scmp.lt.s32.totalorder %s1101_s12, 3  ;;  %452 = vmatpush.bf16.msra.mxu0 %v1165_v0  ;;  %s1415_s24 = smov 80   ;;  %vm471_vm1 = vcmask 130048   ;;  %vm614_vm2 = vcmask 1043456   ;;  %vm515_vm3 = vcmask 64512   ;;  %vm654_vm4 = vcmask 125952  }
  0x1e   : > { %s1416_s25 = smov 96   ;;  %s1417_s30 = smov 48   ;;  %vm715_vm5 = vcmask 257152   ;;  %vm914_vm13 = vcmask 523264  }
  0x1f   : > { %s1708_s12 = smov (!%p416_p13, %s1101_s12), 3  ;;  %s1420_s26 = smov 16  }
  0x20   : > { %s1102_s19 = sshll.u32 %s1708_s12, 3  ;;  %s1418_s12 = smov 112  }
  0x21   : > { %s419_s13 = scalar_lea.vmem %s1684_s0, %s1102_s19  ;;  %453 = vmatpush.bf16.msra.mxu0 %v1164_v1  ;;  %s1419_s19 = smov 64  }
  0x22   : > { %v1567_v2 = vld [vmem:[%s419_s13] sm:$0xff]  ;;  %v1569_v3 = vld [vmem:[%s419_s13 + $0x8] sm:$0xff]  ;;  %s412_s16 = sand.u32 1, %s1401_s18  }
  0x23   : > { %v425_v4 = vpack.c.bf16 %v1569_v3, %v1567_v2 }
  0x25   : > { %1111 = vmatmul.msk.bf16.vlgmr.msra.gmra.mxu0 %vm442_vm0, %v425_v4 }
  0xa2   : > { %v455_v5 = vpop.f32.mrf.mxu0 }
  0xa3   : > { %v464_v6 = vpack.c.bf16 %v455_v5, %v455_v5  ;;  %v460_v12 = vmul.f32 0.25, %v455_v5 }
  0xa5   : > { %v467_v7 = vunpack.c.l.b16 %v464_v6  ;;  %v462_v16 = vpack.c.bf16 %v460_v12, %v460_v12 }
  0xa7   : > { %v468_v8 = vpack.c.b16 %v467_v7, %v467_v7  ;;  %v519_v18 = vunpack.c.l.b16 %v462_v16 }
  0xa9   : > { %523 = vrot.lane.b32.xlu0 %v468_v8, %s1415_s24  ;;  %v520_v20 = vpack.c.b16 %v519_v18, %v519_v18 }
  0xaa   : > { %v457_v9 = vpop.f32.mrf.mxu0 }
  0xab   : > { %v461_v10 = vmul.f32 0.25, %v457_v9  ;;  %v465_v11 = vpack.c.bf16 %v457_v9, %v457_v9 }
  0xad   : > { %v492_v13 = vunpack.c.l.b16 %v465_v11  ;;  %v463_v14 = vpack.c.bf16 %v461_v10, %v461_v10 }
  0xaf   : > { %v493_v15 = vpack.c.b16 %v492_v13, %v492_v13  ;;  %v545_v17 = vunpack.c.l.b16 %v463_v14 }
  0xb1   : > { %469 = vrot.lane.b32.xlu0 %v468_v8, %s1416_s25  ;;  %549 = vrot.lane.b32.xlu2 %v493_v15, %s1415_s24  ;;  %v546_v19 = vpack.c.b16 %v545_v17, %v545_v17 }
  0xb2   : > { %494 = vrot.lane.b32.xlu1 %v493_v15, %s1416_s25 }
  0xb9   : > { %663 = vrot.lane.b32.xlu0 %v468_v8, %s1417_s30  ;;  %547 = vrot.lane.b32.xlu2 %v546_v19, %s1418_s12 }
  0xba   : > { %521 = vrot.lane.b32.xlu1 %v520_v20, %s1418_s12  ;;  %s1100_s12 = sshll.u32 %s412_s16, 4 }
  0xbb   : > { %s414_s14 = scalar_lea.vmem [#allocation9], %s1100_s12 }
  0xbc   : > { %s1005_s15 = sshll.u32 %s414_s14, 4  ;;  %s1006_s15 = int_to_ptr.vmem [resolvable:$true] %s1005_s15 }
  0xc1   : > { %609 = vrot.lane.b32.xlu0 %v468_v8, %s1419_s19  ;;  %631 = vrot.lane.b32.xlu2 %v493_v15, %s1419_s19  ;;  %s1175_s19 = sshll.u32 %s1505_s21, 4  ;;  %s993_s21 = scalar_lea.sflag [#allocation6], %s412_s16 }
  0xc2   : > { %684 = vrot.lane.b32.xlu1 %v493_v15, %s1417_s30  ;;  %s1004_s13 = scalar_lea.hbm %s1695_s11, %s1175_s19  ;;  %s1359_s19 = scalar_lea.hbm %s1695_s11, 32 }
  0xc3   : > { %s1007_s22 = sshll.u32 %s1004_s13, 4  ;;  %s1008_s22 = int_to_ptr.hbm [resolvable:$true] %s1007_s22 }
  0xc4   : > { %s1353_s24 = sshra.s32 %s1008_s22, 4  ;;  %s1354_s24 = int_to_ptr.hbm [resolvable:$true] %s1353_s24 }
  0xc5   : > { %s1355_s25 = scalar_lea.hbm %s1354_s24, 16  ;;  %p1360_p3 = scmp.lt.s32.totalorder %s1354_s24, %s1695_s11 }
  0xc6   : > { %p1356_p0 = scmp.ne.s32.totalorder %s1354_s24, %s1355_s25  ;;  %p1361_p4 = scmp.lt.s32.totalorder %s1359_s19, %s1355_s25 }
  0xc8   : > { %p1357_p1 = pnand %p1356_p0, %p1522_p5  ;;  %p1362_p7 = por %p1361_p4, %p1360_p3 }
  0xca   : > { %p1358_p2 = pneg %p1357_p1 }
  0xcc   : > { %p1363_p8 = pnand %p1362_p7, %p1358_p2 }
 0x10b   : > { %v550_v21 = vpop.permute.xlu2 %549 }
 0x10c   : > { %v555_v22 = vsel %vm471_vm1, %v550_v21, 0 }
 0x10d   : > { %564 = vmatpush.bf16.xpose.msrb.mxu0 %v555_v22 }
 0x113   : > { %v548_v23 = vpop.permute.xlu2 %547 }
 0x114   : > { %1115 = vmatmul.msk.bf16.vlgmr.msrb.gmra.mxu0 %vm471_vm1, %v548_v23 }
 0x11b   : > { %v524_v24 = vpop.permute.xlu0 %523  ;;  %v632_v26 = vpop.permute.xlu2 %631 }
 0x11c   : > { %v529_v25 = vsel %vm471_vm1, %v524_v24, 0  ;;  %v637_v31 = vsel %vm614_vm2, %v632_v26, 0 }
 0x11d   : > { %538 = vmatpush.bf16.xpose.msra.mxu3 %v529_v25 }
 0x123   : > { %v470_v27 = vpop.permute.xlu0 %469 }
 0x124   : > { %v495_v28 = vpop.permute.xlu1 %494  ;;  %v476_v29 = vsel %vm471_vm1, %v470_v27, 0 }
 0x125   : > { %485 = vmatpush.bf16.xpose.msra.mxu1 %v476_v29  ;;  %v500_v30 = vsel %vm471_vm1, %v495_v28, 0 }
 0x126   : > { %509 = vmatpush.bf16.xpose.msra.mxu2 %v500_v30 }
 0x12b   : > { %v664_v32 = vpop.permute.xlu0 %663 }
 0x12c   : > { %v522_v33 = vpop.permute.xlu1 %521  ;;  %1112 = vmatmul.msk.bf16.vlgmr.msra.gmra.mxu1 %vm471_vm1, %v462_v16  ;;  %v669_v34 = vsel %vm614_vm2, %v664_v32, 0 }
 0x12d   : > { %1113 = vmatmul.msk.bf16.vlgmr.msra.gmra.mxu2 %vm471_vm1, %v463_v14  ;;  %1114 = vmatmul.msk.bf16.vlgmr.msra.gmra.mxu3 %vm471_vm1, %v522_v33  ;;  %v1167_v33 = vld [vmem:[#allocation4] sm:$0xff] }
 0x12e   : > { %646 = vmatpush.bf16.msrb.mxu2 %v637_v31  ;;  %678 = vmatpush.bf16.msrb.mxu3 %v669_v34  ;;  %v1168_v31 = vld [vmem:[#allocation4 + $0x8] sm:$0xff] }
 0x133   : > { %v610_v35 = vpop.permute.xlu0 %609 }
 0x134   : > { %v685_v36 = vpop.permute.xlu1 %684  ;;  %v616_v37 = vsel %vm614_vm2, %v610_v35, 0 }
 0x135   : > { %v690_v38 = vsel %vm614_vm2, %v685_v36, 0  ;;  %625 = vmatpush.bf16.msrb.mxu1 %v616_v37 }
 0x136   : > { %699 = vmatpush.bf16.msra.mxu0 %v690_v38 }
 0x139   : > { %750 = vmatpush.bf16.msra.mxu1 %v1168_v31 }
 0x13d   : > { %751 = vmatpush.bf16.msra.mxu1 %v1167_v33 }
 0x191   : > { %v566_v39 = vpop.f32.mrf.mxu0 }
 0x192   : > { %572 = vst.msk [vmem:[#allocation2 + $0x18] sm:$0xff] %vm515_vm3, %v566_v39 }
 0x199   : > { %v568_v40 = vpop.f32.mrf.mxu0  ;;  %v576_v46 = vld [vmem:[#allocation2 + $0x18] sm:$0xff] }
 0x1a9   : > { %v487_v41 = vpop.f32.mrf.mxu1 }
 0x1aa   : > { %516 = vst.msk [vmem:[#allocation2] sm:$0xff] %vm515_vm3, %v487_v41 }
 0x1b0   : > { %v511_v42 = vpop.f32.mrf.mxu2  ;;  %v540_v43 = vpop.f32.mrf.mxu3 }
 0x1b1   : > { %517 = vst.msk [vmem:[#allocation2 + $0x8] sm:$0xff] %vm515_vm3, %v511_v42  ;;  %v489_v44 = vpop.f32.mrf.mxu1  ;;  %v573_v50 = vld [vmem:[#allocation2] sm:$0xff]  ;;  %v1421_v42 = vmov 32.0  }
 0x1b2   : > { %571 = vst.msk [vmem:[#allocation2 + $0x10] sm:$0xff] %vm515_vm3, %v540_v43 }
 0x1b8   : > { %v574_v45 = vld [vmem:[#allocation2 + $0x8] sm:$0xff]  ;;  %v513_v47 = vpop.f32.mrf.mxu2  ;;  %v542_v48 = vpop.f32.mrf.mxu3 }
 0x1b9   : > { %v578_v49 = vmax.f32 %v574_v45, %v576_v46  ;;  %v575_v51 = vld [vmem:[#allocation2 + $0x10] sm:$0xff] }
 0x1ba   : > { %v577_v52 = vmax.f32 %v573_v50, %v575_v51 }
 0x1bb   : > { %v580_v53 = vsub.f32 %v574_v45, %v578_v49  ;;  %v592_v54 = vsub.f32 %v576_v46, %v578_v49 }
 0x1bc   : > { %v579_v55 = vsub.f32 %v573_v50, %v577_v52  ;;  %v591_v56 = vsub.f32 %v575_v51, %v577_v52 }
 0x1bd   : > { %v583_v57 = vmul.f32 1.442695, %v580_v53  ;;  %v595_v58 = vmul.f32 1.442695, %v592_v54 }
 0x1be   : > { %v593_v59 = vmul.f32 1.442695, %v591_v56  ;;  %v581_v60 = vmul.f32 1.442695, %v579_v55 }
 0x1bf   : > { %1253 = vpow2.f32 %v583_v57  ;;  %v1170_v57 = vld [vmem:[#allocation7 + $0x8] sm:$0xff] }
 0x1c0   : > { %1255 = vpow2.f32 %v595_v58  ;;  %851 = vmatpush.bf16.msra.mxu2 %v1170_v57 }
 0x1c1   : > { %1257 = vpow2.f32 %v593_v59 }
 0x1c2   : > { %1259 = vpow2.f32 %v581_v60  ;;  %v1169_v60 = vld [vmem:[#allocation7] sm:$0xff] }
 0x1c4   : > { %852 = vmatpush.bf16.msra.mxu2 %v1169_v60 }
 0x1c5   : > { %v1254_v61 = vpop.eup %1253 }
 0x1c6   : > { %v1256_v62 = vpop.eup %1255  ;;  %586 = vst.msk [vmem:[#allocation2 + $0x8] sm:$0xff] %vm515_vm3, %v1254_v61 }
 0x1c7   : > { %v1258_v63 = vpop.eup %1257  ;;  %598 = vst.msk [vmem:[#allocation2 + $0x18] sm:$0xff] %vm515_vm3, %v1256_v62  ;;  %v600_v0 = vadd.f32 %v1256_v62, %v1254_v61 }
 0x1c8   : > { %v1260_v1 = vpop.eup %1259  ;;  %597 = vst.msk [vmem:[#allocation2 + $0x10] sm:$0xff] %vm515_vm3, %v1258_v63 }
 0x1c9   : > { %585 = vst.msk [vmem:[#allocation2] sm:$0xff] %vm515_vm3, %v1260_v1  ;;  %v599_v4 = vadd.f32 %v1260_v1, %v1258_v63  ;;  %1261 = vrcp.f32 %v600_v0 }
 0x1cb   : > { %1263 = vrcp.f32 %v599_v4 }
 0x1cc   : > { %1265 = vrcp.f32 %v1421_v42 }
 0x1cd   : > { %v604_v5 = vld [vmem:[#allocation2 + $0x8] sm:$0xff] }
 0x1ce   : > { %v658_v6 = vld [vmem:[#allocation2 + $0x18] sm:$0xff] }
 0x1cf   : > { %v1262_v7 = vpop.eup %1261  ;;  %v657_v8 = vld [vmem:[#allocation2 + $0x10] sm:$0xff] }
 0x1d0   : > { %v603_v9 = vld [vmem:[#allocation2] sm:$0xff]  ;;  %v606_v10 = vmul.f32 %v1262_v7, %v604_v5  ;;  %v660_v11 = vmul.f32 %v1262_v7, %v658_v6 }
 0x1d1   : > { %v1264_v12 = vpop.eup %1263 }
 0x1d2   : > { %v605_v13 = vmul.f32 %v1264_v12, %v603_v9  ;;  %v608_v14 = vpack.c.bf16 %v606_v10, %v606_v10  ;;  %v659_v15 = vmul.f32 %v1264_v12, %v657_v8  ;;  %v662_v16 = vpack.c.bf16 %v660_v11, %v660_v11  ;;  %v1266_v43 = vpop.eup %1265 }
 0x1d3   : > { %v767_v44 = vmul.f32 32.0, %v1266_v43  ;;  %vm771_vm6 = vweird.f32 %v1266_v43 }
 0x1d4   : > { %v607_v17 = vpack.c.bf16 %v605_v13, %v605_v13  ;;  %1117 = vmatmul.msk.bf16.vlgmr.msrb.gmra.mxu2 %vm515_vm3, %v608_v14  ;;  %v661_v18 = vpack.c.bf16 %v659_v15, %v659_v15  ;;  %1119 = vmatmul.msk.bf16.vlgmr.msra.gmra.mxu0 %vm515_vm3, %v662_v16  ;;  %v1247_v15 = vld [vmem:[%s1687_s3] ss:$0 sm:$0xff] }
 0x1d5   : > { %v768_v45 = vsub.f32 1.0, %v767_v44 }
 0x1d6   : > { %1116 = vmatmul.msk.bf16.vlgmr.msrb.gmra.mxu1 %vm515_vm3, %v607_v17  ;;  %1118 = vmatmul.msk.bf16.vlgmr.msrb.gmra.mxu3 %vm515_vm3, %v661_v18 }
 0x1d7   : > { %v769_v46 = vmul.f32 %v1266_v43, %v768_v45 }
 0x1d9   : > { %v770_v47 = vadd.f32 %v1266_v43, %v769_v46 }
 0x1db   : > { %v1603_v48 = vsel %vm771_vm6, %v1266_v43, %v770_v47 }
 0x251   : > { %v701_v19 = vpop.f32.mrf.mxu0 }
 0x252   : > { %v706_v20 = vpack.c.bf16 %v701_v19, %v701_v19  ;;  %v1248_v19 = vld [vmem:[%s1688_s4] ss:$0 sm:$0xff] }
 0x253   : > { %v627_v21 = vpop.f32.mrf.mxu1 }
 0x254   : > { %v652_v22 = vpack.c.bf16 %v627_v21, %v627_v21  ;;  %711 = vrot.lane.b32.xlu2 %v706_v20, %s1420_s26 }
 0x256   : > { %655 = vst.msk [vmem:[#allocation3] sm:$0xf] %vm654_vm4, %v652_v22 }
 0x257   : > { %v648_v23 = vpop.f32.mrf.mxu2 }
 0x258   : > { %v653_v24 = vpack.c.bf16 %v648_v23, %v648_v23 }
 0x259   : > { %v680_v25 = vpop.f32.mrf.mxu3  ;;  %v703_v26 = vpop.f32.mrf.mxu0 }
 0x25a   : > { %656 = vst.msk [vmem:[#allocation3 + $0x4] sm:$0xf] %vm654_vm4, %v653_v24  ;;  %v705_v27 = vpack.c.bf16 %v680_v25, %v680_v25  ;;  %v1174_v26 = vld [vmem:[%s1691_s7 + $0x18] sm:$0xff] }
 0x25b   : > { %v629_v28 = vpop.f32.mrf.mxu1  ;;  %922 = vmatpush.bf16.msra.mxu3 %v1174_v26  ;;  %v1252_v26 = vld [vmem:[%s1694_s10] ss:$0 sm:$0xff] }
 0x25c   : > { %709 = vrot.lane.b32.xlu1 %v705_v27, %s1420_s26  ;;  %v1173_v27 = vld [vmem:[%s1691_s7 + $0x10] sm:$0xff]  ;;  %v1172_v28 = vld [vmem:[%s1691_s7 + $0x8] sm:$0xff] }
 0x25f   : > { %v650_v29 = vpop.f32.mrf.mxu2  ;;  %923 = vmatpush.bf16.msra.mxu3 %v1173_v27 }
 0x260   : > { %v1249_v29 = vld [vmem:[%s1690_s6] ss:$0 sm:$0xff] }
 0x261   : > { %v682_v30 = vpop.f32.mrf.mxu3 }
 0x262   : > { %v1171_v30 = vld [vmem:[%s1691_s7] sm:$0xff] }
 0x263   : > { %924 = vmatpush.bf16.msra.mxu3 %v1172_v28 }
 0x267   : > { %925 = vmatpush.bf16.msra.mxu3 %v1171_v30 }
 0x2ae   : > { %v712_v32 = vpop.permute.xlu2 %711 }
 0x2af   : > { %717 = vst.msk [vmem:[#allocation3 + $0x4] sm:$0xf] %vm715_vm5, %v712_v32 }
 0x2ce   : > { %v710_v34 = vpop.permute.xlu1 %709 }
 0x2cf   : > { %716 = vst.msk [vmem:[#allocation3] sm:$0xf] %vm715_vm5, %v710_v34 }
 0x2d6   : > { %v1166_v35 = vld [vmem:[#allocation3] sm:$0xff] }
 0x2d7   : > { %1132 = vmatmul.msk.bf16.vlgmr.msra.gmra.mxu1 %vm442_vm0, %v1166_v35 }
 0x354   : > { %v753_v36 = vpop.f32.mrf.mxu1 }
 0x355   : > { %v754_v37 = vadd.f32 %v753_v36, %v1567_v2 }
 0x357   : > { %v760_v38 = vsel %vm442_vm0, %v754_v37, 0.0 }
 0x358   : > { %761 = vadd.xlane.f32.xlu0 %v760_v38 }
 0x35c   : > { %v755_v39 = vpop.f32.mrf.mxu1 }
 0x35d   : > { %v756_v40 = vadd.f32 %v755_v39, %v1569_v3 }
 0x35f   : > { %v763_v41 = vsel %vm442_vm0, %v756_v40, 0.0 }
 0x360   : > { %764 = vadd.xlane.f32.xlu1 %v763_v41 }
 0x3cb   : > { %v762_v2 = vpop.xlane.xlu0 %761 }
 0x3cc   : > { %v773_v49 = vmul.f32 %v1603_v48, %v762_v2 }
 0x3ce   : > { %v775_v50 = vsub.f32 %v754_v37, %v773_v49 }
 0x3d0   : > { %v777_v51 = vmul.f32 %v775_v50, %v775_v50 }
 0x3d2   : > { %v779_v3 = vsel %vm442_vm0, %v777_v51, 0.0 }
 0x3d3   : > { %v765_v52 = vpop.xlane.xlu1 %764  ;;  %780 = vadd.xlane.f32.xlu2 %v779_v3 }
 0x3d4   : > { %v774_v53 = vmul.f32 %v1603_v48, %v765_v52 }
 0x3d6   : > { %v776_v54 = vsub.f32 %v756_v40, %v774_v53  ;;  %v1250_v53 = vld [vmem:[%s1692_s8] ss:$0 sm:$0xff] }
 0x3d8   : > { %v778_v55 = vmul.f32 %v776_v54, %v776_v54 }
 0x3da   : > { %v782_v56 = vsel %vm442_vm0, %v778_v55, 0.0 }
 0x3db   : > { %783 = vadd.xlane.f32.xlu2 %v782_v56 }
 0x446   : > { %v781_v58 = vpop.xlane.xlu2 %780 }
 0x447   : > { %v785_v59 = vmul.f32 %v781_v58, %v1603_v48 }
 0x449   : > { %v787_v61 = vadd.f32 1e-05, %v785_v59 }
 0x44b   : > { %1267 = vrsqrt.f32 %v787_v61  ;;  %vm795_vm8 = vweird.f32 %v787_v61 }
 0x44e   : > { %v784_v62 = vpop.xlane.xlu2 %783 }
 0x44f   : > { %v786_v63 = vmul.f32 %v784_v62, %v1603_v48 }
 0x451   : > { %v1268_v0 = vpop.eup %1267  ;;  %v788_v1 = vadd.f32 1e-05, %v786_v63 }
 0x452   : > { %v790_v4 = vmul.f32 %v1268_v0, %v787_v61  ;;  %vm796_vm7 = vweird.f32 %v1268_v0 }
 0x453   : > { %1269 = vrsqrt.f32 %v788_v1  ;;  %vm797_vm9 = vmor %vm795_vm8, %vm796_vm7  ;;  %vm805_vm11 = vweird.f32 %v788_v1 }
 0x454   : > { %v791_v5 = vmul.f32 %v1268_v0, %v790_v4 }
 0x456   : > { %v792_v6 = vmul.f32 0.5, %v791_v5 }
 0x458   : > { %v793_v7 = vsub.f32 1.5, %v792_v6 }
 0x459   : > { %v1270_v8 = vpop.eup %1269 }
 0x45a   : > { %v794_v9 = vmul.f32 %v1268_v0, %v793_v7  ;;  %v800_v10 = vmul.f32 %v1270_v8, %v788_v1  ;;  %vm806_vm10 = vweird.f32 %v1270_v8 }
 0x45b   : > { %vm807_vm12 = vmor %vm805_vm11, %vm806_vm10 }
 0x45c   : > { %v801_v11 = vmul.f32 %v1270_v8, %v800_v10  ;;  %v798_v12 = vsel %vm797_vm9, %v1268_v0, %v794_v9 }
 0x45d   : > { %v809_v16 = vmul.f32 %v798_v12, %v775_v50 }
 0x45e   : > { %v802_v13 = vmul.f32 0.5, %v801_v11 }
 0x45f   : > { %v814_v20 = vmul.f32 %v1247_v15, %v809_v16 }
 0x460   : > { %v803_v14 = vsub.f32 1.5, %v802_v13 }
 0x461   : > { %v819_v23 = vadd.f32 %v1248_v19, %v814_v20 }
 0x462   : > { %v804_v17 = vmul.f32 %v1270_v8, %v803_v14 }
 0x464   : > { %v808_v18 = vsel %vm807_vm12, %v1270_v8, %v804_v17 }
 0x465   : > { %v810_v21 = vmul.f32 %v808_v18, %v776_v54 }
 0x467   : > { %v815_v22 = vmul.f32 %v1247_v15, %v810_v21 }
 0x469   : > { %v820_v24 = vadd.f32 %v1248_v19, %v815_v22 }
 0x46b   : > { %v821_v25 = vpack.c.bf16 %v820_v24, %v819_v23 }
 0x46d   : > { %1141 = vmatmul.msk.bf16.vlgmr.msra.gmra.mxu2 %vm442_vm0, %v821_v25 }
 0x4f0   : > { %v854_v31 = vpop.f32.mrf.mxu2 }
 0x4f1   : > { %v855_v32 = vadd.f32 %v1249_v29, %v854_v31 }
 0x4f3   : > { %v861_v33 = vmul.f32 %v855_v32, %v855_v32  ;;  %v859_v2 = vmul.f32 0.5, %v855_v32 }
 0x4f5   : > { %v863_v34 = vmul.f32 %v861_v33, %v855_v32 }
 0x4f7   : > { %v865_v35 = vmul.f32 0.044715, %v863_v34 }
 0x4f8   : > { %v856_v36 = vpop.f32.mrf.mxu2 }
 0x4f9   : > { %v867_v37 = vadd.f32 %v865_v35, %v855_v32  ;;  %v857_v38 = vadd.f32 %v1249_v29, %v856_v36 }
 0x4fb   : > { %v862_v39 = vmul.f32 %v857_v38, %v857_v38  ;;  %v869_v40 = vmul.f32 0.7978846, %v867_v37  ;;  %v860_v49 = vmul.f32 0.5, %v857_v38 }
 0x4fd   : > { %v864_v41 = vmul.f32 %v862_v39, %v857_v38  ;;  %1271 = vtanh.f32 %v869_v40 }
 0x4ff   : > { %v866_v42 = vmul.f32 0.044715, %v864_v41 }
 0x501   : > { %v868_v43 = vadd.f32 %v866_v42, %v857_v38 }
 0x503   : > { %v870_v44 = vmul.f32 0.7978846, %v868_v43  ;;  %v1272_v45 = vpop.eup %1271 }
 0x504   : > { %v873_v46 = vadd.f32 1.0, %v1272_v45 }
 0x505   : > { %1273 = vtanh.f32 %v870_v44 }
 0x506   : > { %v875_v51 = vmul.f32 %v873_v46, %v859_v2 }
 0x50b   : > { %v1274_v47 = vpop.eup %1273 }
 0x50c   : > { %v874_v50 = vadd.f32 1.0, %v1274_v47 }
 0x50e   : > { %v876_v3 = vmul.f32 %v874_v50, %v860_v49 }
 0x510   : > { %v877_v52 = vpack.c.bf16 %v876_v3, %v875_v51 }
 0x512   : > { %1158 = vmatmul.msk.bf16.vlgmr.msra.gmra.mxu3 %vm914_vm13, %v877_v52 }
 0x595   : > { %v927_v54 = vpop.f32.mrf.mxu3 }
 0x596   : > { %v928_v55 = vadd.f32 %v1250_v53, %v927_v54 }
 0x598   : > { %v932_v56 = vadd.f32 %v928_v55, %v819_v23 }
 0x59a   : > { %v936_v57 = vsel %vm442_vm0, %v932_v56, 0.0 }
 0x59b   : > { %937 = vadd.xlane.f32.xlu0 %v936_v57 }
 0x59d   : > { %v929_v58 = vpop.f32.mrf.mxu3 }
 0x59e   : > { %v930_v59 = vadd.f32 %v1250_v53, %v929_v58 }
 0x5a0   : > { %v933_v60 = vadd.f32 %v930_v59, %v820_v24  ;;  %v1251_v24 = vld [vmem:[%s1693_s9] ss:$0 sm:$0xff] }
 0x5a2   : > { %v939_v61 = vsel %vm442_vm0, %v933_v60, 0.0 }
 0x5a3   : > { %940 = vadd.xlane.f32.xlu1 %v939_v61 }
 0x60e   : > { %v938_v62 = vpop.xlane.xlu0 %937 }
 0x60f   : > { %v942_v63 = vmul.f32 %v938_v62, %v1603_v48 }
 0x611   : > { %v944_v0 = vsub.f32 %v932_v56, %v942_v63 }
 0x613   : > { %v946_v1 = vmul.f32 %v944_v0, %v944_v0 }
 0x615   : > { %v948_v4 = vsel %vm442_vm0, %v946_v1, 0.0 }
 0x616   : > { %v941_v5 = vpop.xlane.xlu1 %940  ;;  %949 = vadd.xlane.f32.xlu2 %v948_v4 }
 0x617   : > { %v943_v6 = vmul.f32 %v941_v5, %v1603_v48 }
 0x619   : > { %v945_v7 = vsub.f32 %v933_v60, %v943_v6 }
 0x61b   : > { %v947_v8 = vmul.f32 %v945_v7, %v945_v7 }
 0x61d   : > { %v951_v9 = vsel %vm442_vm0, %v947_v8, 0.0 }
 0x61e   : > { %952 = vadd.xlane.f32.xlu0 %v951_v9 }
 0x689   : > { %v950_v10 = vpop.xlane.xlu2 %949 }
 0x68a   : > { %v954_v11 = vmul.f32 %v950_v10, %v1603_v48 }
 0x68c   : > { %v956_v12 = vadd.f32 1e-05, %v954_v11 }
 0x68e   : > { %1275 = vrsqrt.f32 %v956_v12  ;;  %vm964_vm15 = vweird.f32 %v956_v12 }
 0x691   : > { %v953_v13 = vpop.xlane.xlu0 %952 }
 0x692   : > { %v955_v14 = vmul.f32 %v953_v13, %v1603_v48 }
 0x694   : > { %v1276_v15 = vpop.eup %1275  ;;  %v957_v16 = vadd.f32 1e-05, %v955_v14 }
 0x695   : > { %v959_v17 = vmul.f32 %v1276_v15, %v956_v12  ;;  %vm965_vm14 = vweird.f32 %v1276_v15 }
 0x696   : > { %1277 = vrsqrt.f32 %v957_v16  ;;  %vm966_vm1 = vmor %vm964_vm15, %vm965_vm14  ;;  %vm974_vm3 = vweird.f32 %v957_v16 }
 0x697   : > { %v960_v18 = vmul.f32 %v1276_v15, %v959_v17 }
 0x699   : > { %v961_v19 = vmul.f32 0.5, %v960_v18 }
 0x69b   : > { %v962_v20 = vsub.f32 1.5, %v961_v19 }
 0x69c   : > { %v1278_v21 = vpop.eup %1277 }
 0x69d   : > { %v963_v22 = vmul.f32 %v1276_v15, %v962_v20  ;;  %v969_v23 = vmul.f32 %v1278_v21, %v957_v16  ;;  %vm975_vm2 = vweird.f32 %v1278_v21 }
 0x69e   : > { %vm976_vm4 = vmor %vm974_vm3, %vm975_vm2 }
 0x69f   : > { %v967_v48 = vsel %vm966_vm1, %v1276_v15, %v963_v22  ;;  %v970_v25 = vmul.f32 %v1278_v21, %v969_v23 }
 0x6a0   : > { %v978_v27 = vmul.f32 %v967_v48, %v944_v0 }
 0x6a1   : > { %v971_v28 = vmul.f32 0.5, %v970_v25 }
 0x6a2   : > { %v983_v29 = vmul.f32 %v1251_v24, %v978_v27 }
 0x6a3   : > { %v972_v30 = vsub.f32 1.5, %v971_v28 }
 0x6a4   : > { %v988_v31 = vadd.f32 %v1252_v26, %v983_v29 }
 0x6a5   : > { %v973_v32 = vmul.f32 %v1278_v21, %v972_v30 }
 0x6a6   : > { %990 = vst.msk [vmem:[%s414_s14] sm:$0xff] %vm442_vm0, %v988_v31 }
 0x6a7   : > { %v977_v33 = vsel %vm976_vm4, %v1278_v21, %v973_v32 }
 0x6a8   : > { %v979_v34 = vmul.f32 %v977_v33, %v945_v7 }
 0x6aa   : > { %v984_v35 = vmul.f32 %v1251_v24, %v979_v34 }
 0x6ac   : > { %v989_v36 = vadd.f32 %v1252_v26, %v984_v35 }
 0x6ae   : > { %991 = vst.msk [vmem:[%s414_s14 + $0x8] sm:$0xff] %vm442_vm0, %v989_v36 }
 0x6af   : > { %1366 = shalt.err (!%p1363_p8)
}
 0x6b0   : > { %s1422_s16 = smov 128   ;;  %s1423_s13 = smov 8  }
 0x6b1   : > { %1184 = dma.vmem_to_hbm [thread:$0]  (%p1522_p5), %s1006_s15, 256, %s1008_s22, %s993_s21, %s1422_s16, %s1422_s16, %s1423_s13  }
 0x6b2 PF: > { %p1201_p9 = scmp.ge.s32.totalorder %s1409_s20, 2  ;;  %s1022_s14 = sand.u32 1, %s1397_s17  }
 0x6b3   : > { %s1023_s30 = scalar_lea.sflag [#allocation6], %s1022_s14 }
 0x6b4   : > { %p1194_p10 = pnand %p1201_p9, %p1526_p6 }
 0x6b6   : > { %p1195_p11 = pneg %p1194_p10 }
 0x6b8   : > { %1392 = dma.done.wait (%p1195_p11), %s1023_s30, 256  }
 0x6b9   : > { %1394 = vsyncadd (%p1195_p11), %s1023_s30, 4294967040  ;;  %s1702_s24 = sld [smem:[#allocation13_spill]]  ;;  %p23_p12 = scmp.ge.s32.totalorder %s1509_s23, 4  }
 0x6ba   : > { %s1703_s19 = sld [smem:[#allocation14_spill]]  ;;  %s1704_s17 = smov %s1401_s18 }
 0x6bb   : > { %s1706_s20 = smov %s1509_s23  ;;  %25 = sbr.rel (!%p23_p12) target bundleno = 5 (0x5), region = 109 }
 0x6bf   : > { %s1705_s18 = smov %s1702_s24 }
 0x6c0   :  { %1029 = vsyncpa [#allocation5], 1 }
 0x6c1   :  { %1031 = vsyncpa [#allocation5 + $0x1], 1 }
 0x6c2   :  { %1032 = vsyncpa [#allocation8], 1 }
 0x6c3   :  { %1033 = vsyncpa [#allocation6], 1 }
 0x6c4   :  { %1035 = vsyncpa [#allocation6 + $0x1], 1 }

// kernel: tpu_custom_call.1
= control target key start
LH: loop header
LB: loop body
LE: loop exit
PB: predicated region body
PF: predicated region fallthrough
CT: control target
= control target key end

     0   :  { %16 = vsyncpa [#allocation5], 0  ;;  %s1684_s0 = inlined_call_operand.vmem [shape: f32[4,8,32], index: 0, kind: input, shape index: {}]   ;;  %s1685_s1 = inlined_call_operand.vmem [shape: bf16[32,96], index: 1, kind: input, shape index: {}]   ;;  %s1686_s2 = inlined_call_operand.hbm [shape: bf16[32,32], index: 2, kind: input, shape index: {}]   ;;  %s1687_s3 = inlined_call_operand.vmem [shape: f32[1,32], index: 3, kind: input, shape index: {}]   ;;  %s1688_s4 = inlined_call_operand.vmem [shape: f32[1,32], index: 4, kind: input, shape index: {}]   ;;  %s1689_s5 = inlined_call_operand.hbm [shape: bf16[32,64], index: 5, kind: input, shape index: {}]   ;;  %s1690_s6 = inlined_call_operand.vmem [shape: f32[1,64], index: 6, kind: input, shape index: {}]   ;;  %s1691_s7 = inlined_call_operand.vmem [shape: bf16[64,32], index: 7, kind: input, shape index: {}]   ;;  %s1692_s8 = inlined_call_operand.vmem [shape: f32[1,32], index: 8, kind: input, shape index: {}]   ;;  %s1693_s9 = inlined_call_operand.vmem [shape: f32[1,32], index: 9, kind: input, shape index: {}]   ;;  %s1694_s10 = inlined_call_operand.vmem [shape: f32[1,32], index: 10, kind: input, shape index: {}]   ;;  %s1695_s11 = inlined_call_operand.hbm [shape: f32[4,8,32], index: 11, kind: output, shape index: {}]  }
   0x1   :  { %17 = vsyncpa [#allocation8], 0 }
   0x2   :  { %18 = vsyncpa [#allocation6], 0 }
   0x3   :  { %20 = vsyncpa [#allocation6 + $0x1], 0  ;;  %s1484_s17 = smov 0   ;;  %s1486_s18 = smov 0  }
   0x4   :  { %s1488_s19 = smov 0   ;;  %s1490_s20 = smov 0  }
   0x5 LB: > { %1697 = sst [smem:[#allocation13_spill]] %s1405_s19  ;;  %s1505_s21 = sadd.s32 4294967295, %s1409_s20   ;;  %s1409_s20 = sphi %s1490_s20, %s1706_s20   ;;  %s1405_s19 = sphi %s1488_s19, %s1703_s19   ;;  %s1401_s18 = sphi %s1486_s18, %s1705_s18   ;;  %s1397_s17 = sphi %s1484_s17, %s1704_s17  }
   0x6   : > { %s1092_s22 = sadd.s32 4294967294, %s1409_s20   ;;  %s1509_s23 = sadd.s32 1, %s1409_s20  }
   0x7   : > { %s269_s24 = sadd.s32 1, %s1405_s19  ;;  %s266_s25 = ssub.s32 %s1409_s20, %s1509_s23 }
   0x8   : > { %p279_p0 = scmp.ne.s32.totalorder %s1405_s19, %s1401_s18  ;;  %p267_p1 = scmp.eq.s32.totalorder %s266_s25, 0 }
   0x9   : > { %p280_p2 = scmp.eq.s32.totalorder %s1505_s21, 1  ;;  %p285_p3 = scmp.ne.s32.totalorder %s1401_s18, %s1397_s17 }
   0xa   : > { %p286_p4 = scmp.eq.s32.totalorder %s1092_s22, 1  ;;  %p1093_p7 = scmp.ge.s32.totalorder %s1409_s20, 1 }
   0xb   : > { %s1520_s26 = scalar_select %p267_p1, %s1405_s19, %s269_s24  }
   0xc   : > { %p1522_p5 = por %p280_p2, %p279_p0  ;;  %p1526_p6 = por %p286_p4, %p285_p3 }
   0xd   : > { %1698 = sst [smem:[#allocation14_spill]] %s1520_s26  ;;  %p293_p8 = scmp.lt.s32.totalorder %s1409_s20, 3 }
   0xe   : > { %p1197_p9 = scmp.eq.s32.totalorder %s1505_s21, 0  ;;  %s307_s13 = sshll.u32 %s1686_s2, 4  ;;  %s308_s13 = int_to_ptr.hbm [resolvable:$true] %s307_s13 }
   0xf   : > { %p1533_p10 = pnand %p1093_p7, %p293_p8  ;;  %s1411_s14 = smov [#allocation4]  }
  0x10   : > { %s309_s15 = sshll.u32 %s1411_s14, 4  ;;  %s327_s24 = sshll.u32 %s1689_s5, 4  ;;  %s310_s15 = int_to_ptr.vmem [resolvable:$true] %s309_s15  ;;  %s328_s24 = int_to_ptr.hbm [resolvable:$true] %s327_s24 }
  0x11   : > { %p1186_p11 = pneg %p1533_p10  ;;  %s1412_s25 = smov 64  }
  0x12   : > { %s1413_s26 = smov 4   ;;  %s1414_s19 = smov [#allocation7]  }
  0x13   : > { %p1187_p12 = pnand %p1197_p9, %p1186_p11  ;;  %s329_s30 = sshll.u32 %s1414_s19, 4  ;;  %s330_s30 = int_to_ptr.vmem [resolvable:$true] %s329_s30 }
  0x14   : > { %369 = sbr.rel (%p1533_p10) target bundleno = 1714 (0x6b2), region = 64 }
  0x15   : > { %1189 = dma.hbm_to_vmem [thread:$0]  (!%p1187_p12), %s308_s13, 256, %s310_s15, [#allocation5], %s1412_s25, %s1412_s25, %s1413_s26  }
  0x16   : > { %1192 = dma.hbm_to_vmem [thread:$0]  (!%p1187_p12), %s328_s24, 256, %s330_s30, [#allocation8], %s1412_s25, %s1412_s25, %s1413_s26  }
  0x19   : > { %1384 = dma.done.wait (%p1197_p9), [#allocation5], 256  }
  0x1a   : > { %1386 = vsyncadd (%p1197_p9), [#allocation5], 4294967040 }
  0x1b   : > { %1388 = dma.done.wait (%p1197_p9), [#allocation8], 256  }
  0x1c   : > { %1390 = vsyncadd (%p1197_p9), [#allocation8], 4294967040  ;;  %s1101_s12 = sshll.u32 %s1505_s21, 1  ;;  %v1165_v0 = vld [vmem:[%s1685_s1 + $0x8] sm:$0xff]  ;;  %v1164_v1 = vld [vmem:[%s1685_s1] sm:$0xff]  ;;  %vm442_vm0 = vcmask 261120  }
  0x1d   : > { %p416_p13 = scmp.lt.s32.totalorder %s1101_s12, 3  ;;  %452 = vmatpush.bf16.msra.mxu0 %v1165_v0  ;;  %s1415_s24 = smov 80   ;;  %vm471_vm1 = vcmask 130048   ;;  %vm614_vm2 = vcmask 1043456   ;;  %vm515_vm3 = vcmask 64512   ;;  %vm654_vm4 = vcmask 125952  }
  0x1e   : > { %s1416_s25 = smov 96   ;;  %s1417_s30 = smov 48   ;;  %vm715_vm5 = vcmask 257152   ;;  %vm914_vm13 = vcmask 523264  }
  0x1f   : > { %s1708_s12 = smov (!%p416_p13, %s1101_s12), 3  ;;  %s1420_s26 = smov 16  }
  0x20   : > { %s1102_s19 = sshll.u32 %s1708_s12, 3  ;;  %s1418_s12 = smov 112  }
  0x21   : > { %s419_s13 = scalar_lea.vmem %s1684_s0, %s1102_s19  ;;  %453 = vmatpush.bf16.msra.mxu0 %v1164_v1  ;;  %s1419_s19 = smov 64  }
  0x22   : > { %v1567_v2 = vld [vmem:[%s419_s13] sm:$0xff]  ;;  %v1569_v3 = vld [vmem:[%s419_s13 + $0x8] sm:$0xff]  ;;  %s412_s16 = sand.u32 1, %s1401_s18  }
  0x23   : > { %v425_v4 = vpack.c.bf16 %v1569_v3, %v1567_v2 }
  0x25   : > { %1111 = vmatmul.msk.bf16.vlgmr.msra.gmra.mxu0 %vm442_vm0, %v425_v4 }
  0xa2   : > { %v455_v5 = vpop.f32.mrf.mxu0 }
  0xa3   : > { %v464_v6 = vpack.c.bf16 %v455_v5, %v455_v5  ;;  %v460_v12 = vmul.f32 0.25, %v455_v5 }
  0xa5   : > { %v467_v7 = vunpack.c.l.b16 %v464_v6  ;;  %v462_v16 = vpack.c.bf16 %v460_v12, %v460_v12 }
  0xa7   : > { %v468_v8 = vpack.c.b16 %v467_v7, %v467_v7  ;;  %v519_v18 = vunpack.c.l.b16 %v462_v16 }
  0xa9   : > { %523 = vrot.lane.b32.xlu0 %v468_v8, %s1415_s24  ;;  %v520_v20 = vpack.c.b16 %v519_v18, %v519_v18 }
  0xaa   : > { %v457_v9 = vpop.f32.mrf.mxu0 }
  0xab   : > { %v461_v10 = vmul.f32 0.25, %v457_v9  ;;  %v465_v11 = vpack.c.bf16 %v457_v9, %v457_v9 }
  0xad   : > { %v492_v13 = vunpack.c.l.b16 %v465_v11  ;;  %v463_v14 = vpack.c.bf16 %v461_v10, %v461_v10 }
  0xaf   : > { %v493_v15 = vpack.c.b16 %v492_v13, %v492_v13  ;;  %v545_v17 = vunpack.c.l.b16 %v463_v14 }
  0xb1   : > { %469 = vrot.lane.b32.xlu0 %v468_v8, %s1416_s25  ;;  %549 = vrot.lane.b32.xlu2 %v493_v15, %s1415_s24  ;;  %v546_v19 = vpack.c.b16 %v545_v17, %v545_v17 }
  0xb2   : > { %494 = vrot.lane.b32.xlu1 %v493_v15, %s1416_s25 }
  0xb9   : > { %663 = vrot.lane.b32.xlu0 %v468_v8, %s1417_s30  ;;  %547 = vrot.lane.b32.xlu2 %v546_v19, %s1418_s12 }
  0xba   : > { %521 = vrot.lane.b32.xlu1 %v520_v20, %s1418_s12  ;;  %s1100_s12 = sshll.u32 %s412_s16, 4 }
  0xbb   : > { %s414_s14 = scalar_lea.vmem [#allocation9], %s1100_s12 }
  0xbc   : > { %s1005_s15 = sshll.u32 %s414_s14, 4  ;;  %s1006_s15 = int_to_ptr.vmem [resolvable:$true] %s1005_s15 }
  0xc1   : > { %609 = vrot.lane.b32.xlu0 %v468_v8, %s1419_s19  ;;  %631 = vrot.lane.b32.xlu2 %v493_v15, %s1419_s19  ;;  %s1175_s19 = sshll.u32 %s1505_s21, 4  ;;  %s993_s21 = scalar_lea.sflag [#allocation6], %s412_s16 }
  0xc2   : > { %684 = vrot.lane.b32.xlu1 %v493_v15, %s1417_s30  ;;  %s1004_s13 = scalar_lea.hbm %s1695_s11, %s1175_s19  ;;  %s1359_s19 = scalar_lea.hbm %s1695_s11, 32 }
  0xc3   : > { %s1007_s22 = sshll.u32 %s1004_s13, 4  ;;  %s1008_s22 = int_to_ptr.hbm [resolvable:$true] %s1007_s22 }
  0xc4   : > { %s1353_s24 = sshra.s32 %s1008_s22, 4  ;;  %s1354_s24 = int_to_ptr.hbm [resolvable:$true] %s1353_s24 }
  0xc5   : > { %s1355_s25 = scalar_lea.hbm %s1354_s24, 16  ;;  %p1360_p3 = scmp.lt.s32.totalorder %s1354_s24, %s1695_s11 }
  0xc6   : > { %p1356_p0 = scmp.ne.s32.totalorder %s1354_s24, %s1355_s25  ;;  %p1361_p4 = scmp.lt.s32.totalorder %s1359_s19, %s1355_s25 }
  0xc8   : > { %p1357_p1 = pnand %p1356_p0, %p1522_p5  ;;  %p1362_p7 = por %p1361_p4, %p1360_p3 }
  0xca   : > { %p1358_p2 = pneg %p1357_p1 }
  0xcc   : > { %p1363_p8 = pnand %p1362_p7, %p1358_p2 }
 0x10b   : > { %v550_v21 = vpop.permute.xlu2 %549 }
 0x10c   : > { %v555_v22 = vsel %vm471_vm1, %v550_v21, 0 }
 0x10d   : > { %564 = vmatpush.bf16.xpose.msrb.mxu0 %v555_v22 }
 0x113   : > { %v548_v23 = vpop.permute.xlu2 %547 }
 0x114   : > { %1115 = vmatmul.msk.bf16.vlgmr.msrb.gmra.mxu0 %vm471_vm1, %v548_v23 }
 0x11b   : > { %v524_v24 = vpop.permute.xlu0 %523  ;;  %v632_v26 = vpop.permute.xlu2 %631 }
 0x11c   : > { %v529_v25 = vsel %vm471_vm1, %v524_v24, 0  ;;  %v637_v31 = vsel %vm614_vm2, %v632_v26, 0 }
 0x11d   : > { %538 = vmatpush.bf16.xpose.msra.mxu3 %v529_v25 }
 0x123   : > { %v470_v27 = vpop.permute.xlu0 %469 }
 0x124   : > { %v495_v28 = vpop.permute.xlu1 %494  ;;  %v476_v29 = vsel %vm471_vm1, %v470_v27, 0 }
 0x125   : > { %485 = vmatpush.bf16.xpose.msra.mxu1 %v476_v29  ;;  %v500_v30 = vsel %vm471_vm1, %v495_v28, 0 }
 0x126   : > { %509 = vmatpush.bf16.xpose.msra.mxu2 %v500_v30 }
 0x12b   : > { %v664_v32 = vpop.permute.xlu0 %663 }
 0x12c   : > { %v522_v33 = vpop.permute.xlu1 %521  ;;  %1112 = vmatmul.msk.bf16.vlgmr.msra.gmra.mxu1 %vm471_vm1, %v462_v16  ;;  %v669_v34 = vsel %vm614_vm2, %v664_v32, 0 }
 0x12d   : > { %1113 = vmatmul.msk.bf16.vlgmr.msra.gmra.mxu2 %vm471_vm1, %v463_v14  ;;  %1114 = vmatmul.msk.bf16.vlgmr.msra.gmra.mxu3 %vm471_vm1, %v522_v33  ;;  %v1167_v33 = vld [vmem:[#allocation4] sm:$0xff] }
 0x12e   : > { %646 = vmatpush.bf16.msrb.mxu2 %v637_v31  ;;  %678 = vmatpush.bf16.msrb.mxu3 %v669_v34  ;;  %v1168_v31 = vld [vmem:[#allocation4 + $0x8] sm:$0xff] }
 0x133   : > { %v610_v35 = vpop.permute.xlu0 %609 }
 0x134   : > { %v685_v36 = vpop.permute.xlu1 %684  ;;  %v616_v37 = vsel %vm614_vm2, %v610_v35, 0 }
 0x135   : > { %v690_v38 = vsel %vm614_vm2, %v685_v36, 0  ;;  %625 = vmatpush.bf16.msrb.mxu1 %v616_v37 }
 0x136   : > { %699 = vmatpush.bf16.msra.mxu0 %v690_v38 }
 0x139   : > { %750 = vmatpush.bf16.msra.mxu1 %v1168_v31 }
 0x13d   : > { %751 = vmatpush.bf16.msra.mxu1 %v1167_v33 }
 0x191   : > { %v566_v39 = vpop.f32.mrf.mxu0 }
 0x192   : > { %572 = vst.msk [vmem:[#allocation2 + $0x18] sm:$0xff] %vm515_vm3, %v566_v39 }
 0x199   : > { %v568_v40 = vpop.f32.mrf.mxu0  ;;  %v576_v46 = vld [vmem:[#allocation2 + $0x18] sm:$0xff] }
 0x1a9   : > { %v487_v41 = vpop.f32.mrf.mxu1 }
 0x1aa   : > { %516 = vst.msk [vmem:[#allocation2] sm:$0xff] %vm515_vm3, %v487_v41 }
 0x1b0   : > { %v511_v42 = vpop.f32.mrf.mxu2  ;;  %v540_v43 = vpop.f32.mrf.mxu3 }
 0x1b1   : > { %517 = vst.msk [vmem:[#allocation2 + $0x8] sm:$0xff] %vm515_vm3, %v511_v42  ;;  %v489_v44 = vpop.f32.mrf.mxu1  ;;  %v573_v50 = vld [vmem:[#allocation2] sm:$0xff]  ;;  %v1421_v42 = vmov 32.0  }
 0x1b2   : > { %571 = vst.msk [vmem:[#allocation2 + $0x10] sm:$0xff] %vm515_vm3, %v540_v43 }
 0x1b8   : > { %v574_v45 = vld [vmem:[#allocation2 + $0x8] sm:$0xff]  ;;  %v513_v47 = vpop.f32.mrf.mxu2  ;;  %v542_v48 = vpop.f32.mrf.mxu3 }
 0x1b9   : > { %v578_v49 = vmax.f32 %v574_v45, %v576_v46  ;;  %v575_v51 = vld [vmem:[#allocation2 + $0x10] sm:$0xff] }
 0x1ba   : > { %v577_v52 = vmax.f32 %v573_v50, %v575_v51 }
 0x1bb   : > { %v580_v53 = vsub.f32 %v574_v45, %v578_v49  ;;  %v592_v54 = vsub.f32 %v576_v46, %v578_v49 }
 0x1bc   : > { %v579_v55 = vsub.f32 %v573_v50, %v577_v52  ;;  %v591_v56 = vsub.f32 %v575_v51, %v577_v52 }
 0x1bd   : > { %v583_v57 = vmul.f32 1.442695, %v580_v53  ;;  %v595_v58 = vmul.f32 1.442695, %v592_v54 }
 0x1be   : > { %v593_v59 = vmul.f32 1.442695, %v591_v56  ;;  %v581_v60 = vmul.f32 1.442695, %v579_v55 }
 0x1bf   : > { %1253 = vpow2.f32 %v583_v57  ;;  %v1170_v57 = vld [vmem:[#allocation7 + $0x8] sm:$0xff] }
 0x1c0   : > { %1255 = vpow2.f32 %v595_v58  ;;  %851 = vmatpush.bf16.msra.mxu2 %v1170_v57 }
 0x1c1   : > { %1257 = vpow2.f32 %v593_v59 }
 0x1c2   : > { %1259 = vpow2.f32 %v581_v60  ;;  %v1169_v60 = vld [vmem:[#allocation7] sm:$0xff] }
 0x1c4   : > { %852 = vmatpush.bf16.msra.mxu2 %v1169_v60 }
 0x1c5   : > { %v1254_v61 = vpop.eup %1253 }
 0x1c6   : > { %v1256_v62 = vpop.eup %1255  ;;  %586 = vst.msk [vmem:[#allocation2 + $0x8] sm:$0xff] %vm515_vm3, %v1254_v61 }
 0x1c7   : > { %v1258_v63 = vpop.eup %1257  ;;  %598 = vst.msk [vmem:[#allocation2 + $0x18] sm:$0xff] %vm515_vm3, %v1256_v62  ;;  %v600_v0 = vadd.f32 %v1256_v62, %v1254_v61 }
 0x1c8   : > { %v1260_v1 = vpop.eup %1259  ;;  %597 = vst.msk [vmem:[#allocation2 + $0x10] sm:$0xff] %vm515_vm3, %v1258_v63 }
 0x1c9   : > { %585 = vst.msk [vmem:[#allocation2] sm:$0xff] %vm515_vm3, %v1260_v1  ;;  %v599_v4 = vadd.f32 %v1260_v1, %v1258_v63  ;;  %1261 = vrcp.f32 %v600_v0 }
 0x1cb   : > { %1263 = vrcp.f32 %v599_v4 }
 0x1cc   : > { %1265 = vrcp.f32 %v1421_v42 }
 0x1cd   : > { %v604_v5 = vld [vmem:[#allocation2 + $0x8] sm:$0xff] }
 0x1ce   : > { %v658_v6 = vld [vmem:[#allocation2 + $0x18] sm:$0xff] }
 0x1cf   : > { %v1262_v7 = vpop.eup %1261  ;;  %v657_v8 = vld [vmem:[#allocation2 + $0x10] sm:$0xff] }
 0x1d0   : > { %v603_v9 = vld [vmem:[#allocation2] sm:$0xff]  ;;  %v606_v10 = vmul.f32 %v1262_v7, %v604_v5  ;;  %v660_v11 = vmul.f32 %v1262_v7, %v658_v6 }
 0x1d1   : > { %v1264_v12 = vpop.eup %1263 }
 0x1d2   : > { %v605_v13 = vmul.f32 %v1264_v12, %v603_v9  ;;  %v608_v14 = vpack.c.bf16 %v606_v10, %v606_v10  ;;  %v659_v15 = vmul.f32 %v1264_v12, %v657_v8  ;;  %v662_v16 = vpack.c.bf16 %v660_v11, %v660_v11  ;;  %v1266_v43 = vpop.eup %1265 }
 0x1d3   : > { %v767_v44 = vmul.f32 32.0, %v1266_v43  ;;  %vm771_vm6 = vweird.f32 %v1266_v43 }
 0x1d4   : > { %v607_v17 = vpack.c.bf16 %v605_v13, %v605_v13  ;;  %1117 = vmatmul.msk.bf16.vlgmr.msrb.gmra.mxu2 %vm515_vm3, %v608_v14  ;;  %v661_v18 = vpack.c.bf16 %v659_v15, %v659_v15  ;;  %1119 = vmatmul.msk.bf16.vlgmr.msra.gmra.mxu0 %vm515_vm3, %v662_v16  ;;  %v1247_v15 = vld [vmem:[%s1687_s3] ss:$0 sm:$0xff] }
 0x1d5   : > { %v768_v45 = vsub.f32 1.0, %v767_v44 }
 0x1d6   : > { %1116 = vmatmul.msk.bf16.vlgmr.msrb.gmra.mxu1 %vm515_vm3, %v607_v17  ;;  %1118 = vmatmul.msk.bf16.vlgmr.msrb.gmra.mxu3 %vm515_vm3, %v661_v18 }
 0x1d7   : > { %v769_v46 = vmul.f32 %v1266_v43, %v768_v45 }
 0x1d9   : > { %v770_v47 = vadd.f32 %v1266_v43, %v769_v46 }
 0x1db   : > { %v1603_v48 = vsel %vm771_vm6, %v1266_v43, %v770_v47 }
 0x251   : > { %v701_v19 = vpop.f32.mrf.mxu0 }
 0x252   : > { %v706_v20 = vpack.c.bf16 %v701_v19, %v701_v19  ;;  %v1248_v19 = vld [vmem:[%s1688_s4] ss:$0 sm:$0xff] }
 0x253   : > { %v627_v21 = vpop.f32.mrf.mxu1 }
 0x254   : > { %v652_v22 = vpack.c.bf16 %v627_v21, %v627_v21  ;;  %711 = vrot.lane.b32.xlu2 %v706_v20, %s1420_s26 }
 0x256   : > { %655 = vst.msk [vmem:[#allocation3] sm:$0xf] %vm654_vm4, %v652_v22 }
 0x257   : > { %v648_v23 = vpop.f32.mrf.mxu2 }
 0x258   : > { %v653_v24 = vpack.c.bf16 %v648_v23, %v648_v23 }
 0x259   : > { %v680_v25 = vpop.f32.mrf.mxu3  ;;  %v703_v26 = vpop.f32.mrf.mxu0 }
 0x25a   : > { %656 = vst.msk [vmem:[#allocation3 + $0x4] sm:$0xf] %vm654_vm4, %v653_v24  ;;  %v705_v27 = vpack.c.bf16 %v680_v25, %v680_v25  ;;  %v1174_v26 = vld [vmem:[%s1691_s7 + $0x18] sm:$0xff] }
 0x25b   : > { %v629_v28 = vpop.f32.mrf.mxu1  ;;  %922 = vmatpush.bf16.msra.mxu3 %v1174_v26  ;;  %v1252_v26 = vld [vmem:[%s1694_s10] ss:$0 sm:$0xff] }
 0x25c   : > { %709 = vrot.lane.b32.xlu1 %v705_v27, %s1420_s26  ;;  %v1173_v27 = vld [vmem:[%s1691_s7 + $0x10] sm:$0xff]  ;;  %v1172_v28 = vld [vmem:[%s1691_s7 + $0x8] sm:$0xff] }
 0x25f   : > { %v650_v29 = vpop.f32.mrf.mxu2  ;;  %923 = vmatpush.bf16.msra.mxu3 %v1173_v27 }
 0x260   : > { %v1249_v29 = vld [vmem:[%s1690_s6] ss:$0 sm:$0xff] }
 0x261   : > { %v682_v30 = vpop.f32.mrf.mxu3 }
 0x262   : > { %v1171_v30 = vld [vmem:[%s1691_s7] sm:$0xff] }
 0x263   : > { %924 = vmatpush.bf16.msra.mxu3 %v1172_v28 }
 0x267   : > { %925 = vmatpush.bf16.msra.mxu3 %v1171_v30 }
 0x2ae   : > { %v712_v32 = vpop.permute.xlu2 %711 }
 0x2af   : > { %717 = vst.msk [vmem:[#allocation3 + $0x4] sm:$0xf] %vm715_vm5, %v712_v32 }
 0x2ce   : > { %v710_v34 = vpop.permute.xlu1 %709 }
 0x2cf   : > { %716 = vst.msk [vmem:[#allocation3] sm:$0xf] %vm715_vm5, %v710_v34 }
 0x2d6   : > { %v1166_v35 = vld [vmem:[#allocation3] sm:$0xff] }
 0x2d7   : > { %1132 = vmatmul.msk.bf16.vlgmr.msra.gmra.mxu1 %vm442_vm0, %v1166_v35 }
 0x354   : > { %v753_v36 = vpop.f32.mrf.mxu1 }
 0x355   : > { %v754_v37 = vadd.f32 %v753_v36, %v1567_v2 }
 0x357   : > { %v760_v38 = vsel %vm442_vm0, %v754_v37, 0.0 }
 0x358   : > { %761 = vadd.xlane.f32.xlu0 %v760_v38 }
 0x35c   : > { %v755_v39 = vpop.f32.mrf.mxu1 }
 0x35d   : > { %v756_v40 = vadd.f32 %v755_v39, %v1569_v3 }
 0x35f   : > { %v763_v41 = vsel %vm442_vm0, %v756_v40, 0.0 }
 0x360   : > { %764 = vadd.xlane.f32.xlu1 %v763_v41 }
 0x3cb   : > { %v762_v2 = vpop.xlane.xlu0 %761 }
 0x3cc   : > { %v773_v49 = vmul.f32 %v1603_v48, %v762_v2 }
 0x3ce   : > { %v775_v50 = vsub.f32 %v754_v37, %v773_v49 }
 0x3d0   : > { %v777_v51 = vmul.f32 %v775_v50, %v775_v50 }
 0x3d2   : > { %v779_v3 = vsel %vm442_vm0, %v777_v51, 0.0 }
 0x3d3   : > { %v765_v52 = vpop.xlane.xlu1 %764  ;;  %780 = vadd.xlane.f32.xlu2 %v779_v3 }
 0x3d4   : > { %v774_v53 = vmul.f32 %v1603_v48, %v765_v52 }
 0x3d6   : > { %v776_v54 = vsub.f32 %v756_v40, %v774_v53  ;;  %v1250_v53 = vld [vmem:[%s1692_s8] ss:$0 sm:$0xff] }
 0x3d8   : > { %v778_v55 = vmul.f32 %v776_v54, %v776_v54 }
 0x3da   : > { %v782_v56 = vsel %vm442_vm0, %v778_v55, 0.0 }
 0x3db   : > { %783 = vadd.xlane.f32.xlu2 %v782_v56 }
 0x446   : > { %v781_v58 = vpop.xlane.xlu2 %780 }
 0x447   : > { %v785_v59 = vmul.f32 %v781_v58, %v1603_v48 }
 0x449   : > { %v787_v61 = vadd.f32 1e-05, %v785_v59 }
 0x44b   : > { %1267 = vrsqrt.f32 %v787_v61  ;;  %vm795_vm8 = vweird.f32 %v787_v61 }
 0x44e   : > { %v784_v62 = vpop.xlane.xlu2 %783 }
 0x44f   : > { %v786_v63 = vmul.f32 %v784_v62, %v1603_v48 }
 0x451   : > { %v1268_v0 = vpop.eup %1267  ;;  %v788_v1 = vadd.f32 1e-05, %v786_v63 }
 0x452   : > { %v790_v4 = vmul.f32 %v1268_v0, %v787_v61  ;;  %vm796_vm7 = vweird.f32 %v1268_v0 }
 0x453   : > { %1269 = vrsqrt.f32 %v788_v1  ;;  %vm797_vm9 = vmor %vm795_vm8, %vm796_vm7  ;;  %vm805_vm11 = vweird.f32 %v788_v1 }
 0x454   : > { %v791_v5 = vmul.f32 %v1268_v0, %v790_v4 }
 0x456   : > { %v792_v6 = vmul.f32 0.5, %v791_v5 }
 0x458   : > { %v793_v7 = vsub.f32 1.5, %v792_v6 }
 0x459   : > { %v1270_v8 = vpop.eup %1269 }
 0x45a   : > { %v794_v9 = vmul.f32 %v1268_v0, %v793_v7  ;;  %v800_v10 = vmul.f32 %v1270_v8, %v788_v1  ;;  %vm806_vm10 = vweird.f32 %v1270_v8 }
 0x45b   : > { %vm807_vm12 = vmor %vm805_vm11, %vm806_vm10 }
 0x45c   : > { %v801_v11 = vmul.f32 %v1270_v8, %v800_v10  ;;  %v798_v12 = vsel %vm797_vm9, %v1268_v0, %v794_v9 }
 0x45d   : > { %v809_v16 = vmul.f32 %v798_v12, %v775_v50 }
 0x45e   : > { %v802_v13 = vmul.f32 0.5, %v801_v11 }
 0x45f   : > { %v814_v20 = vmul.f32 %v1247_v15, %v809_v16 }
 0x460   : > { %v803_v14 = vsub.f32 1.5, %v802_v13 }
 0x461   : > { %v819_v23 = vadd.f32 %v1248_v19, %v814_v20 }
 0x462   : > { %v804_v17 = vmul.f32 %v1270_v8, %v803_v14 }
 0x464   : > { %v808_v18 = vsel %vm807_vm12, %v1270_v8, %v804_v17 }
 0x465   : > { %v810_v21 = vmul.f32 %v808_v18, %v776_v54 }
 0x467   : > { %v815_v22 = vmul.f32 %v1247_v15, %v810_v21 }
 0x469   : > { %v820_v24 = vadd.f32 %v1248_v19, %v815_v22 }
 0x46b   : > { %v821_v25 = vpack.c.bf16 %v820_v24, %v819_v23 }
 0x46d   : > { %1141 = vmatmul.msk.bf16.vlgmr.msra.gmra.mxu2 %vm442_vm0, %v821_v25 }
 0x4f0   : > { %v854_v31 = vpop.f32.mrf.mxu2 }
 0x4f1   : > { %v855_v32 = vadd.f32 %v1249_v29, %v854_v31 }
 0x4f3   : > { %v861_v33 = vmul.f32 %v855_v32, %v855_v32  ;;  %v859_v2 = vmul.f32 0.5, %v855_v32 }
 0x4f5   : > { %v863_v34 = vmul.f32 %v861_v33, %v855_v32 }
 0x4f7   : > { %v865_v35 = vmul.f32 0.044715, %v863_v34 }
 0x4f8   : > { %v856_v36 = vpop.f32.mrf.mxu2 }
 0x4f9   : > { %v867_v37 = vadd.f32 %v865_v35, %v855_v32  ;;  %v857_v38 = vadd.f32 %v1249_v29, %v856_v36 }
 0x4fb   : > { %v862_v39 = vmul.f32 %v857_v38, %v857_v38  ;;  %v869_v40 = vmul.f32 0.7978846, %v867_v37  ;;  %v860_v49 = vmul.f32 0.5, %v857_v38 }
 0x4fd   : > { %v864_v41 = vmul.f32 %v862_v39, %v857_v38  ;;  %1271 = vtanh.f32 %v869_v40 }
 0x4ff   : > { %v866_v42 = vmul.f32 0.044715, %v864_v41 }
 0x501   : > { %v868_v43 = vadd.f32 %v866_v42, %v857_v38 }
 0x503   : > { %v870_v44 = vmul.f32 0.7978846, %v868_v43  ;;  %v1272_v45 = vpop.eup %1271 }
 0x504   : > { %v873_v46 = vadd.f32 1.0, %v1272_v45 }
 0x505   : > { %1273 = vtanh.f32 %v870_v44 }
 0x506   : > { %v875_v51 = vmul.f32 %v873_v46, %v859_v2 }
 0x50b   : > { %v1274_v47 = vpop.eup %1273 }
 0x50c   : > { %v874_v50 = vadd.f32 1.0, %v1274_v47 }
 0x50e   : > { %v876_v3 = vmul.f32 %v874_v50, %v860_v49 }
 0x510   : > { %v877_v52 = vpack.c.bf16 %v876_v3, %v875_v51 }
 0x512   : > { %1158 = vmatmul.msk.bf16.vlgmr.msra.gmra.mxu3 %vm914_vm13, %v877_v52 }
 0x595   : > { %v927_v54 = vpop.f32.mrf.mxu3 }
 0x596   : > { %v928_v55 = vadd.f32 %v1250_v53, %v927_v54 }
 0x598   : > { %v932_v56 = vadd.f32 %v928_v55, %v819_v23 }
 0x59a   : > { %v936_v57 = vsel %vm442_vm0, %v932_v56, 0.0 }
 0x59b   : > { %937 = vadd.xlane.f32.xlu0 %v936_v57 }
 0x59d   : > { %v929_v58 = vpop.f32.mrf.mxu3 }
 0x59e   : > { %v930_v59 = vadd.f32 %v1250_v53, %v929_v58 }
 0x5a0   : > { %v933_v60 = vadd.f32 %v930_v59, %v820_v24  ;;  %v1251_v24 = vld [vmem:[%s1693_s9] ss:$0 sm:$0xff] }
 0x5a2   : > { %v939_v61 = vsel %vm442_vm0, %v933_v60, 0.0 }
 0x5a3   : > { %940 = vadd.xlane.f32.xlu1 %v939_v61 }
 0x60e   : > { %v938_v62 = vpop.xlane.xlu0 %937 }
 0x60f   : > { %v942_v63 = vmul.f32 %v938_v62, %v1603_v48 }
 0x611   : > { %v944_v0 = vsub.f32 %v932_v56, %v942_v63 }
 0x613   : > { %v946_v1 = vmul.f32 %v944_v0, %v944_v0 }
 0x615   : > { %v948_v4 = vsel %vm442_vm0, %v946_v1, 0.0 }
 0x616   : > { %v941_v5 = vpop.xlane.xlu1 %940  ;;  %949 = vadd.xlane.f32.xlu2 %v948_v4 }
 0x617   : > { %v943_v6 = vmul.f32 %v941_v5, %v1603_v48 }
 0x619   : > { %v945_v7 = vsub.f32 %v933_v60, %v943_v6 }
 0x61b   : > { %v947_v8 = vmul.f32 %v945_v7, %v945_v7 }
 0x61d   : > { %v951_v9 = vsel %vm442_vm0, %v947_v8, 0.0 }
 0x61e   : > { %952 = vadd.xlane.f32.xlu0 %v951_v9 }
 0x689   : > { %v950_v10 = vpop.xlane.xlu2 %949 }
 0x68a   : > { %v954_v11 = vmul.f32 %v950_v10, %v1603_v48 }
 0x68c   : > { %v956_v12 = vadd.f32 1e-05, %v954_v11 }
 0x68e   : > { %1275 = vrsqrt.f32 %v956_v12  ;;  %vm964_vm15 = vweird.f32 %v956_v12 }
 0x691   : > { %v953_v13 = vpop.xlane.xlu0 %952 }
 0x692   : > { %v955_v14 = vmul.f32 %v953_v13, %v1603_v48 }
 0x694   : > { %v1276_v15 = vpop.eup %1275  ;;  %v957_v16 = vadd.f32 1e-05, %v955_v14 }
 0x695   : > { %v959_v17 = vmul.f32 %v1276_v15, %v956_v12  ;;  %vm965_vm14 = vweird.f32 %v1276_v15 }
 0x696   : > { %1277 = vrsqrt.f32 %v957_v16  ;;  %vm966_vm1 = vmor %vm964_vm15, %vm965_vm14  ;;  %vm974_vm3 = vweird.f32 %v957_v16 }
 0x697   : > { %v960_v18 = vmul.f32 %v1276_v15, %v959_v17 }
 0x699   : > { %v961_v19 = vmul.f32 0.5, %v960_v18 }
 0x69b   : > { %v962_v20 = vsub.f32 1.5, %v961_v19 }
 0x69c   : > { %v1278_v21 = vpop.eup %1277 }
 0x69d   : > { %v963_v22 = vmul.f32 %v1276_v15, %v962_v20  ;;  %v969_v23 = vmul.f32 %v1278_v21, %v957_v16  ;;  %vm975_vm2 = vweird.f32 %v1278_v21 }
 0x69e   : > { %vm976_vm4 = vmor %vm974_vm3, %vm975_vm2 }
 0x69f   : > { %v967_v48 = vsel %vm966_vm1, %v1276_v15, %v963_v22  ;;  %v970_v25 = vmul.f32 %v1278_v21, %v969_v23 }
 0x6a0   : > { %v978_v27 = vmul.f32 %v967_v48, %v944_v0 }
 0x6a1   : > { %v971_v28 = vmul.f32 0.5, %v970_v25 }
 0x6a2   : > { %v983_v29 = vmul.f32 %v1251_v24, %v978_v27 }
 0x6a3   : > { %v972_v30 = vsub.f32 1.5, %v971_v28 }
 0x6a4   : > { %v988_v31 = vadd.f32 %v1252_v26, %v983_v29 }
 0x6a5   : > { %v973_v32 = vmul.f32 %v1278_v21, %v972_v30 }
 0x6a6   : > { %990 = vst.msk [vmem:[%s414_s14] sm:$0xff] %vm442_vm0, %v988_v31 }
 0x6a7   : > { %v977_v33 = vsel %vm976_vm4, %v1278_v21, %v973_v32 }
 0x6a8   : > { %v979_v34 = vmul.f32 %v977_v33, %v945_v7 }
 0x6aa   : > { %v984_v35 = vmul.f32 %v1251_v24, %v979_v34 }
 0x6ac   : > { %v989_v36 = vadd.f32 %v1252_v26, %v984_v35 }
 0x6ae   : > { %991 = vst.msk [vmem:[%s414_s14 + $0x8] sm:$0xff] %vm442_vm0, %v989_v36 }
 0x6af   : > { %1366 = shalt.err (!%p1363_p8)
}
 0x6b0   : > { %s1422_s16 = smov 128   ;;  %s1423_s13 = smov 8  }
 0x6b1   : > { %1184 = dma.vmem_to_hbm [thread:$0]  (%p1522_p5), %s1006_s15, 256, %s1008_s22, %s993_s21, %s1422_s16, %s1422_s16, %s1423_s13  }
 0x6b2 PF: > { %p1201_p9 = scmp.ge.s32.totalorder %s1409_s20, 2  ;;  %s1022_s14 = sand.u32 1, %s1397_s17  }
 0x6b3   : > { %s1023_s30 = scalar_lea.sflag [#allocation6], %s1022_s14 }
 0x6b4   : > { %p1194_p10 = pnand %p1201_p9, %p1526_p6 }
 0x6b6   : > { %p1195_p11 = pneg %p1194_p10 }
 0x6b8   : > { %1392 = dma.done.wait (%p1195_p11), %s1023_s30, 256  }
 0x6b9   : > { %1394 = vsyncadd (%p1195_p11), %s1023_s30, 4294967040  ;;  %s1702_s24 = sld [smem:[#allocation13_spill]]  ;;  %p23_p12 = scmp.ge.s32.totalorder %s1509_s23, 4  }
 0x6ba   : > { %s1703_s19 = sld [smem:[#allocation14_spill]]  ;;  %s1704_s17 = smov %s1401_s18 }
 0x6bb   : > { %s1706_s20 = smov %s1509_s23  ;;  %25 = sbr.rel (!%p23_p12) target bundleno = 5 (0x5), region = 109 }
 0x6bf   : > { %s1705_s18 = smov %s1702_s24 }
 0x6c0   :  { %1029 = vsyncpa [#allocation5], 1 }
 0x6c1   :  { %1031 = vsyncpa [#allocation5 + $0x1], 1 }
 0x6c2   :  { %1032 = vsyncpa [#allocation8], 1 }
 0x6c3   :  { %1033 = vsyncpa [#allocation6], 1 }
 0x6c4   :  { %1035 = vsyncpa [#allocation6 + $0x1], 1 }

</bundles_post_ra>
